<compile_context>
chip_gen: v7x
topology: tpu7x:2x2x1
jax: 0.10.0
libtpu: 0.0.40
codegen_flags: <defaults>
</compile_context>

<pallas_src>
import functools

import jax
import jax.numpy as jnp
from jax.experimental import pallas as pl
from jax.experimental.pallas import tpu as pltpu

# ----------------------------- model config ---------------------------------
NTOKEN = 128
NINP = 32
NHID = 32
NLAYERS = 2
SEQ = 8
BATCH = 2


# ----------------------------- fused gather + LSTM + decoder kernel ----------
def _rnn_lm_kernel(tok_ref, emb_ref, h0_ref, c0_ref, w_ref, b_ref,
                   wdec_ref, bdec_ref, out_ref, hn_ref, cn_ref,
                   *, seq, batch, nhid, ntoken, nlayers):
    """Fused embedding gather + L-layer LSTM + Linear decoder, single invocation.

    inputs : tok (S*B,1) i32, emb (ntoken,ninp) bf16, h0/c0 (L,B,H) f32,
             w_all (L, 2H, 4H) bf16  (= [W_ih^T; W_hh^T] per layer, ninp==nhid),
             b_all (L, 1, 4H) f32    (= b_ih + b_hh),
             dec_w_t (H, ntoken) bf16, dec_b (1, ntoken) f32
    outputs: logits (S*B, ntoken) f32, h_n (L,B,H) f32, c_n (L,B,H) f32
    """
    rows = seq * batch
    f32, bf16 = jnp.float32, jnp.bfloat16

    # ---- fused embedding gather: one-hot (S*B, ntoken) @ emb (ntoken, ninp) on the MXU.
    tok = tok_ref[...]                                                  # (S*B, 1) i32
    vocab_ids = jax.lax.broadcasted_iota(jnp.int32, (rows, ntoken), 1)  # (S*B, ntoken)
    onehot = jnp.where(tok == vocab_ids, 1.0, 0.0).astype(bf16)
    x = jnp.dot(onehot, emb_ref[...], preferred_element_type=f32)       # (S*B, ninp), exact
    x = x.astype(bf16)                                                  # lossless (values are bf16)
    # TODO(synk): dropout after embedding / between layers omitted (eval-mode identity).

    # ---- weights resident in VMEM; load + split once, hoisted out of the recurrence.
    wih = [w_ref[l][:nhid, :] for l in range(nlayers)]                  # (H, 4H) bf16
    whh = [w_ref[l][nhid:, :] for l in range(nlayers)]                  # (H, 4H) bf16

    # Hoisted lane mask: lanes [2H, 3H) are the 'g' gate (PyTorch order i, f, g, o).
    lane = jax.lax.broadcasted_iota(jnp.int32, (batch, 4 * nhid), 1)
    g_mask = (lane >= 2 * nhid) & (lane < 3 * nhid)

    def lstm_cell(gates, c):
        # Full-width activations: one tanh + one sigmoid over the whole 128-lane vreg.
        act = jnp.where(g_mask, jnp.tanh(gates), jax.nn.sigmoid(gates))
        i_g = act[:, 0 * nhid:1 * nhid]
        f_g = act[:, 1 * nhid:2 * nhid]
        g_g = act[:, 2 * nhid:3 * nhid]
        o_g = act[:, 3 * nhid:4 * nhid]
        c_new = f_g * c + i_g * g_g                                     # f32 state
        h_new = o_g * jnp.tanh(c_new)
        return h_new, c_new

    # ---- layer-0 input projection hoisted over all timesteps (one MXU matmul) + bias.
    gx0 = jnp.dot(x, wih[0], preferred_element_type=f32) + b_ref[0]     # (S*B, 4H) f32

    # Hoisted bias broadcasts for layers >= 1 (their input projection is per-step).
    bias_b = [None] + [jnp.broadcast_to(b_ref[l], (batch, 4 * nhid))
                       for l in range(1, nlayers)]

    h = [h0_ref[l] for l in range(nlayers)]                             # (B, H) f32
    c = [c0_ref[l] for l in range(nlayers)]

    # ---- wavefront recurrence: at wavefront step wf, layer l runs timestep t = wf - l.
    # All matmuls issued inside one wavefront step are data-independent, so the MXU
    # pipelines them; the dependent-matmul chain is seq + nlayers - 1 steps, not seq*nlayers.
    y_prev = [None] * nlayers      # layer-l output produced in the previous wavefront step
    y_top = []                     # last layer's per-timestep outputs (seq-major)
    for wf in range(seq + nlayers - 1):
        y_new = [None] * nlayers
        for l in range(nlayers):
            t = wf - l
            if 0 <= t < seq:
                if l == 0:
                    gates = gx0[t * batch:(t + 1) * batch, :] + jnp.dot(
                        h[0].astype(bf16), whh[0], preferred_element_type=f32)
                else:
                    gates = (jnp.dot(y_prev[l - 1].astype(bf16), wih[l],
                                     preferred_element_type=f32)
                             + jnp.dot(h[l].astype(bf16), whh[l],
                                       preferred_element_type=f32)
                             + bias_b[l])
                h[l], c[l] = lstm_cell(gates, c[l])
                y_new[l] = h[l]
                if l == nlayers - 1:
                    y_top.append(h[l])
        y_prev = y_new

    # ---- final hidden state written once per layer (not every timestep).
    for l in range(nlayers):
        hn_ref[l] = h[l]
        cn_ref[l] = c[l]

    # ---- decoder: (S*B, H) @ (H, ntoken) + b -> lane-dense (S*B, 128) logits.
    y_cat = jnp.concatenate(y_top, axis=0)                              # (S*B, H) f32, in regs
    out_ref[...] = (jnp.dot(y_cat.astype(bf16), wdec_ref[...],
                            preferred_element_type=f32)
                    + bdec_ref[...]).astype(out_ref.dtype)


def _fused_forward_call(S, B, nhid, ntoken, nlayers):
    kernel = functools.partial(_rnn_lm_kernel, seq=S, batch=B, nhid=nhid,
                               ntoken=ntoken, nlayers=nlayers)
    vmem = lambda: pl.BlockSpec(memory_space=pltpu.MemorySpace.VMEM)
    n_inputs = 8
    return pl.pallas_call(
        kernel,
        out_shape=(
            jax.ShapeDtypeStruct((S * B, ntoken), jnp.float32),     # logits
            jax.ShapeDtypeStruct((nlayers, B, nhid), jnp.float32),  # h_n
            jax.ShapeDtypeStruct((nlayers, B, nhid), jnp.float32),  # c_n
        ),
        in_specs=[vmem() for _ in range(n_inputs)],
        out_specs=(vmem(), vmem(), vmem()),
    )


# ----------------------------- parameter init --------------------------------
def init_params(key):
    """Same init distributions as the PyTorch module; packed/cast for the kernel."""
    assert NINP == NHID, "packed [W_ih^T; W_hh^T] layout assumes ninp == nhid"
    initrange = 0.1
    keys = jax.random.split(key, 2 + 4 * NLAYERS)
    emb = jax.random.uniform(keys[0], (NTOKEN, NINP), minval=-initrange,
                             maxval=initrange, dtype=jnp.float32)
    dec_w = jax.random.uniform(keys[1], (NTOKEN, NHID), minval=-initrange,
                               maxval=initrange, dtype=jnp.float32)
    stdv = 1.0 / float(NHID) ** 0.5
    w_all, b_all = [], []
    for l in range(NLAYERS):
        in_dim = NINP if l == 0 else NHID
        k = keys[2 + 4 * l: 2 + 4 * (l + 1)]
        wih = jax.random.uniform(k[0], (4 * NHID, in_dim), minval=-stdv, maxval=stdv)
        whh = jax.random.uniform(k[1], (4 * NHID, NHID), minval=-stdv, maxval=stdv)
        bih = jax.random.uniform(k[2], (4 * NHID,), minval=-stdv, maxval=stdv)
        bhh = jax.random.uniform(k[3], (4 * NHID,), minval=-stdv, maxval=stdv)
        w_all.append(jnp.concatenate([wih.T, whh.T], axis=0))        # (2H, 4H)
        b_all.append((bih + bhh).reshape(1, 4 * NHID))               # folded bias
    return {
        "emb": emb.astype(jnp.bfloat16),                             # MXU operand
        "w_all": jnp.stack(w_all).astype(jnp.bfloat16),              # (L, 2H, 4H)
        "b_all": jnp.stack(b_all).astype(jnp.float32),               # (L, 1, 4H)
        "dec_w_t": dec_w.T.astype(jnp.bfloat16),                     # (H, ntoken)
        "dec_b": jnp.zeros((1, NTOKEN), jnp.float32),
    }


# ----------------------------- forward ---------------------------------------
def rnn_model_forward(params, tokens, hidden):
    """tokens: (S, B) int32; hidden = (h0, c0), each (nlayers, B, nhid)."""
    h0, c0 = hidden
    S, B = tokens.shape
    tok2d = tokens.reshape(S * B, 1).astype(jnp.int32)   # seq-major rows, gathered in-kernel
    logits2d, h_n, c_n = _fused_forward_call(S, B, NHID, NTOKEN, NLAYERS)(
        tok2d, params["emb"], h0, c0,
        params["w_all"], params["b_all"], params["dec_w_t"], params["dec_b"])
    return logits2d.reshape(S, B, NTOKEN), (h_n, c_n)


def init_hidden(bsz):
    return (jnp.zeros((NLAYERS, bsz, NHID), jnp.float32),
            jnp.zeros((NLAYERS, bsz, NHID), jnp.float32))


# ----------------------------- pure-JAX reference (f32) ----------------------
def rnn_model_forward_ref(params, tokens, hidden):
    S, B = tokens.shape
    x = params["emb"].astype(jnp.float32)[tokens]                    # (S, B, ninp)
    hs, cs = [], []
    for l in range(NLAYERS):
        w = params["w_all"][l].astype(jnp.float32)
        wih, whh = w[:NHID], w[NHID:]
        b = params["b_all"][l]
        hl, cl = hidden[0][l], hidden[1][l]
        outs = []
        for t in range(S):
            gates = x[t] @ wih + hl @ whh + b
            i = jax.nn.sigmoid(gates[:, :NHID])
            f = jax.nn.sigmoid(gates[:, NHID:2 * NHID])
            g = jnp.tanh(gates[:, 2 * NHID:3 * NHID])
            o = jax.nn.sigmoid(gates[:, 3 * NHID:])
            cl = f * cl + i * g
            hl = o * jnp.tanh(cl)
            outs.append(hl)
        x = jnp.stack(outs, axis=0)
        hs.append(hl)
        cs.append(cl)
    dec = x.reshape(S * B, NHID) @ params["dec_w_t"].astype(jnp.float32) + params["dec_b"]
    return dec.reshape(S, B, NTOKEN), (jnp.stack(hs), jnp.stack(cs))


# ----------------------------- main -------------------------------------------
if __name__ == "__main__":
    key = jax.random.PRNGKey(0)
    pkey, tkey = jax.random.split(key)
    params = init_params(pkey)

    tokens = jax.random.randint(tkey, (SEQ, BATCH), 0, NTOKEN, dtype=jnp.int32)
    hidden = init_hidden(BATCH)

    decoded, (h_n, c_n) = jax.jit(rnn_model_forward)(params, tokens, hidden)
    jax.block_until_ready((decoded, h_n, c_n))

    assert decoded.shape == (SEQ, BATCH, NTOKEN)
    assert h_n.shape == (NLAYERS, BATCH, NHID)
    assert c_n.shape == (NLAYERS, BATCH, NHID)
    assert bool(jnp.all(jnp.isfinite(decoded)))
    assert bool(jnp.all(jnp.isfinite(h_n))) and bool(jnp.all(jnp.isfinite(c_n)))

    # Numerical check vs. a pure-JAX f32 reference (loose tolerance: bf16 MXU operands).
    ref_dec, (ref_h, ref_c) = rnn_model_forward_ref(params, tokens, hidden)
    assert float(jnp.max(jnp.abs(decoded - ref_dec))) < 5e-2
    assert float(jnp.max(jnp.abs(h_n - ref_h))) < 5e-2
    assert float(jnp.max(jnp.abs(c_n - ref_c))) < 5e-2

    print("KERNEL_OK")
</pallas_src>

<mosaic_0001>
module attributes {stable_mosaic.version = 11 : i64} {
  func.func @_rnn_lm_kernel(%arg0: memref<16x1xi32, #tpu.memory_space<vmem>>, %arg1: memref<128x32xbf16, #tpu.memory_space<vmem>>, %arg2: memref<2x2x32xf32, #tpu.memory_space<vmem>>, %arg3: memref<2x2x32xf32, #tpu.memory_space<vmem>>, %arg4: memref<2x64x128xbf16, #tpu.memory_space<vmem>>, %arg5: memref<2x1x128xf32, #tpu.memory_space<vmem>>, %arg6: memref<32x128xbf16, #tpu.memory_space<vmem>>, %arg7: memref<1x128xf32, #tpu.memory_space<vmem>>, %arg8: memref<16x128xf32, #tpu.memory_space<vmem>>, %arg9: memref<2x2x32xf32, #tpu.memory_space<vmem>>, %arg10: memref<2x2x32xf32, #tpu.memory_space<vmem>>) attributes {dimension_semantics = [], scalar_prefetch = 0 : i64, scratch_operands = 0 : i64, tpu.core_type = #tpu.core_type<tc>} {
    %c0 = arith.constant 0 : index
    %c0_0 = arith.constant 0 : index
    %0 = vector.load %arg0[%c0, %c0_0] : memref<16x1xi32, #tpu.memory_space<vmem>>, vector<16x1xi32>
    %1 = tpu.iota {dimensions = array<i32: 1>} : vector<16x128xi32>
    %2 = vector.broadcast %0 : vector<16x1xi32> to vector<16x128xi32>
    %3 = arith.cmpi eq, %2, %1 : vector<16x128xi32>
    %cst = arith.constant 1.000000e+00 : f32
    %cst_1 = arith.constant 0.000000e+00 : f32
    %4 = vector.broadcast %cst : f32 to vector<16x128xf32>
    %5 = vector.broadcast %cst_1 : f32 to vector<16x128xf32>
    %6 = arith.select %3, %4, %5 : vector<16x128xi1>, vector<16x128xf32>
    %7 = arith.truncf %6 : vector<16x128xf32> to vector<16x128xbf16>
    %c0_2 = arith.constant 0 : index
    %c0_3 = arith.constant 0 : index
    %8 = vector.load %arg1[%c0_2, %c0_3] : memref<128x32xbf16, #tpu.memory_space<vmem>>, vector<128x32xbf16>
    %cst_4 = arith.constant dense<0.000000e+00> : vector<16x32xf32>
    %9 = tpu.matmul %7, %8, %cst_4 {dimension_numbers = #tpu.dot_dimension_numbers<[1], [0], [0], [1], [0, 0, 1, 1], [], []>} : vector<16x128xbf16>, vector<128x32xbf16>, vector<16x32xf32> -> vector<16x32xf32>
    %10 = arith.truncf %9 : vector<16x32xf32> to vector<16x32xbf16>
    %c0_5 = arith.constant 0 : index
    %c0_6 = arith.constant 0 : index
    %c0_7 = arith.constant 0 : index
    %11 = vector.load %arg4[%c0_5, %c0_6, %c0_7] : memref<2x64x128xbf16, #tpu.memory_space<vmem>>, vector<1x64x128xbf16>
    %12 = vector.shape_cast %11 : vector<1x64x128xbf16> to vector<64x128xbf16>
    %13 = vector.extract_strided_slice %12 {offsets = [0, 0], sizes = [32, 128], strides = [1, 1]} : vector<64x128xbf16> to vector<32x128xbf16>
    %c1 = arith.constant 1 : index
    %c0_8 = arith.constant 0 : index
    %c0_9 = arith.constant 0 : index
    %14 = vector.load %arg4[%c1, %c0_8, %c0_9] : memref<2x64x128xbf16, #tpu.memory_space<vmem>>, vector<1x64x128xbf16>
    %15 = vector.shape_cast %14 : vector<1x64x128xbf16> to vector<64x128xbf16>
    %16 = vector.extract_strided_slice %15 {offsets = [0, 0], sizes = [32, 128], strides = [1, 1]} : vector<64x128xbf16> to vector<32x128xbf16>
    %c0_10 = arith.constant 0 : index
    %c0_11 = arith.constant 0 : index
    %c0_12 = arith.constant 0 : index
    %17 = vector.load %arg4[%c0_10, %c0_11, %c0_12] : memref<2x64x128xbf16, #tpu.memory_space<vmem>>, vector<1x64x128xbf16>
    %18 = vector.shape_cast %17 : vector<1x64x128xbf16> to vector<64x128xbf16>
    %19 = vector.extract_strided_slice %18 {offsets = [32, 0], sizes = [32, 128], strides = [1, 1]} : vector<64x128xbf16> to vector<32x128xbf16>
    %c1_13 = arith.constant 1 : index
    %c0_14 = arith.constant 0 : index
    %c0_15 = arith.constant 0 : index
    %20 = vector.load %arg4[%c1_13, %c0_14, %c0_15] : memref<2x64x128xbf16, #tpu.memory_space<vmem>>, vector<1x64x128xbf16>
    %21 = vector.shape_cast %20 : vector<1x64x128xbf16> to vector<64x128xbf16>
    %22 = vector.extract_strided_slice %21 {offsets = [32, 0], sizes = [32, 128], strides = [1, 1]} : vector<64x128xbf16> to vector<32x128xbf16>
    %23 = tpu.iota {dimensions = array<i32: 1>} : vector<2x128xi32>
    %c64_i32 = arith.constant 64 : i32
    %24 = vector.broadcast %c64_i32 : i32 to vector<2x128xi32>
    %25 = arith.cmpi sge, %23, %24 : vector<2x128xi32>
    %c96_i32 = arith.constant 96 : i32
    %26 = vector.broadcast %c96_i32 : i32 to vector<2x128xi32>
    %27 = arith.cmpi slt, %23, %26 : vector<2x128xi32>
    %28 = arith.andi %25, %27 : vector<2x128xi1>
    %cst_16 = arith.constant dense<0.000000e+00> : vector<16x128xf32>
    %29 = tpu.matmul %10, %13, %cst_16 {dimension_numbers = #tpu.dot_dimension_numbers<[1], [0], [0], [1], [0, 0, 1, 1], [], []>} : vector<16x32xbf16>, vector<32x128xbf16>, vector<16x128xf32> -> vector<16x128xf32>
    %c0_17 = arith.constant 0 : index
    %c0_18 = arith.constant 0 : index
    %c0_19 = arith.constant 0 : index
    %30 = vector.load %arg5[%c0_17, %c0_18, %c0_19] : memref<2x1x128xf32, #tpu.memory_space<vmem>>, vector<1x1x128xf32>
    %31 = vector.shape_cast %30 : vector<1x1x128xf32> to vector<1x128xf32>
    %32 = vector.broadcast %31 : vector<1x128xf32> to vector<16x128xf32>
    %33 = arith.addf %29, %32 : vector<16x128xf32>
    %c1_20 = arith.constant 1 : index
    %c0_21 = arith.constant 0 : index
    %c0_22 = arith.constant 0 : index
    %34 = vector.load %arg5[%c1_20, %c0_21, %c0_22] : memref<2x1x128xf32, #tpu.memory_space<vmem>>, vector<1x1x128xf32>
    %35 = vector.shape_cast %34 : vector<1x1x128xf32> to vector<1x128xf32>
    %36 = vector.shape_cast %35 : vector<1x128xf32> to vector<1x128xf32>
    %37 = vector.broadcast %36 : vector<1x128xf32> to vector<2x128xf32>
    %c0_23 = arith.constant 0 : index
    %c0_24 = arith.constant 0 : index
    %c0_25 = arith.constant 0 : index
    %38 = vector.load %arg2[%c0_23, %c0_24, %c0_25] : memref<2x2x32xf32, #tpu.memory_space<vmem>>, vector<1x2x32xf32>
    %39 = vector.shape_cast %38 : vector<1x2x32xf32> to vector<2x32xf32>
    %c1_26 = arith.constant 1 : index
    %c0_27 = arith.constant 0 : index
    %c0_28 = arith.constant 0 : index
    %40 = vector.load %arg2[%c1_26, %c0_27, %c0_28] : memref<2x2x32xf32, #tpu.memory_space<vmem>>, vector<1x2x32xf32>
    %41 = vector.shape_cast %40 : vector<1x2x32xf32> to vector<2x32xf32>
    %c0_29 = arith.constant 0 : index
    %c0_30 = arith.constant 0 : index
    %c0_31 = arith.constant 0 : index
    %42 = vector.load %arg3[%c0_29, %c0_30, %c0_31] : memref<2x2x32xf32, #tpu.memory_space<vmem>>, vector<1x2x32xf32>
    %43 = vector.shape_cast %42 : vector<1x2x32xf32> to vector<2x32xf32>
    %c1_32 = arith.constant 1 : index
    %c0_33 = arith.constant 0 : index
    %c0_34 = arith.constant 0 : index
    %44 = vector.load %arg3[%c1_32, %c0_33, %c0_34] : memref<2x2x32xf32, #tpu.memory_space<vmem>>, vector<1x2x32xf32>
    %45 = vector.shape_cast %44 : vector<1x2x32xf32> to vector<2x32xf32>
    %46 = vector.extract_strided_slice %33 {offsets = [0, 0], sizes = [2, 128], strides = [1, 1]} : vector<16x128xf32> to vector<2x128xf32>
    %47 = arith.truncf %39 : vector<2x32xf32> to vector<2x32xbf16>
    %cst_35 = arith.constant dense<0.000000e+00> : vector<2x128xf32>
    %48 = tpu.matmul %47, %19, %cst_35 {dimension_numbers = #tpu.dot_dimension_numbers<[1], [0], [0], [1], [0, 0, 1, 1], [], []>} : vector<2x32xbf16>, vector<32x128xbf16>, vector<2x128xf32> -> vector<2x128xf32>
    %49 = arith.addf %46, %48 : vector<2x128xf32>
    %50 = math.tanh %49 : vector<2x128xf32>
    %51 = arith.negf %49 : vector<2x128xf32>
    %52 = math.exp %51 : vector<2x128xf32>
    %cst_36 = arith.constant 1.000000e+00 : f32
    %53 = vector.broadcast %cst_36 : f32 to vector<2x128xf32>
    %54 = arith.addf %53, %52 : vector<2x128xf32>
    %55 = arith.divf %53, %54 : vector<2x128xf32>
    %56 = arith.select %28, %50, %55 : vector<2x128xi1>, vector<2x128xf32>
    %57 = vector.extract_strided_slice %56 {offsets = [0, 0], sizes = [2, 32], strides = [1, 1]} : vector<2x128xf32> to vector<2x32xf32>
    %58 = vector.extract_strided_slice %56 {offsets = [0, 32], sizes = [2, 32], strides = [1, 1]} : vector<2x128xf32> to vector<2x32xf32>
    %59 = vector.extract_strided_slice %56 {offsets = [0, 64], sizes = [2, 32], strides = [1, 1]} : vector<2x128xf32> to vector<2x32xf32>
    %60 = vector.extract_strided_slice %56 {offsets = [0, 96], sizes = [2, 32], strides = [1, 1]} : vector<2x128xf32> to vector<2x32xf32>
    %61 = arith.mulf %58, %43 : vector<2x32xf32>
    %62 = arith.mulf %57, %59 : vector<2x32xf32>
    %63 = arith.addf %61, %62 : vector<2x32xf32>
    %64 = math.tanh %63 : vector<2x32xf32>
    %65 = arith.mulf %60, %64 : vector<2x32xf32>
    %66 = vector.extract_strided_slice %33 {offsets = [2, 0], sizes = [2, 128], strides = [1, 1]} : vector<16x128xf32> to vector<2x128xf32>
    %67 = arith.truncf %65 : vector<2x32xf32> to vector<2x32xbf16>
    %cst_37 = arith.constant dense<0.000000e+00> : vector<2x128xf32>
    %68 = tpu.matmul %67, %19, %cst_37 {dimension_numbers = #tpu.dot_dimension_numbers<[1], [0], [0], [1], [0, 0, 1, 1], [], []>} : vector<2x32xbf16>, vector<32x128xbf16>, vector<2x128xf32> -> vector<2x128xf32>
    %69 = arith.addf %66, %68 : vector<2x128xf32>
    %70 = math.tanh %69 : vector<2x128xf32>
    %71 = arith.negf %69 : vector<2x128xf32>
    %72 = math.exp %71 : vector<2x128xf32>
    %cst_38 = arith.constant 1.000000e+00 : f32
    %73 = vector.broadcast %cst_38 : f32 to vector<2x128xf32>
    %74 = arith.addf %73, %72 : vector<2x128xf32>
    %75 = arith.divf %73, %74 : vector<2x128xf32>
    %76 = arith.select %28, %70, %75 : vector<2x128xi1>, vector<2x128xf32>
    %77 = vector.extract_strided_slice %76 {offsets = [0, 0], sizes = [2, 32], strides = [1, 1]} : vector<2x128xf32> to vector<2x32xf32>
    %78 = vector.extract_strided_slice %76 {offsets = [0, 32], sizes = [2, 32], strides = [1, 1]} : vector<2x128xf32> to vector<2x32xf32>
    %79 = vector.extract_strided_slice %76 {offsets = [0, 64], sizes = [2, 32], strides = [1, 1]} : vector<2x128xf32> to vector<2x32xf32>
    %80 = vector.extract_strided_slice %76 {offsets = [0, 96], sizes = [2, 32], strides = [1, 1]} : vector<2x128xf32> to vector<2x32xf32>
    %81 = arith.mulf %78, %63 : vector<2x32xf32>
    %82 = arith.mulf %77, %79 : vector<2x32xf32>
    %83 = arith.addf %81, %82 : vector<2x32xf32>
    %84 = math.tanh %83 : vector<2x32xf32>
    %85 = arith.mulf %80, %84 : vector<2x32xf32>
    %86 = arith.truncf %65 : vector<2x32xf32> to vector<2x32xbf16>
    %cst_39 = arith.constant dense<0.000000e+00> : vector<2x128xf32>
    %87 = tpu.matmul %86, %16, %cst_39 {dimension_numbers = #tpu.dot_dimension_numbers<[1], [0], [0], [1], [0, 0, 1, 1], [], []>} : vector<2x32xbf16>, vector<32x128xbf16>, vector<2x128xf32> -> vector<2x128xf32>
    %88 = arith.truncf %41 : vector<2x32xf32> to vector<2x32xbf16>
    %cst_40 = arith.constant dense<0.000000e+00> : vector<2x128xf32>
    %89 = tpu.matmul %88, %22, %cst_40 {dimension_numbers = #tpu.dot_dimension_numbers<[1], [0], [0], [1], [0, 0, 1, 1], [], []>} : vector<2x32xbf16>, vector<32x128xbf16>, vector<2x128xf32> -> vector<2x128xf32>
    %90 = arith.addf %87, %89 : vector<2x128xf32>
    %91 = arith.addf %90, %37 : vector<2x128xf32>
    %92 = math.tanh %91 : vector<2x128xf32>
    %93 = arith.negf %91 : vector<2x128xf32>
    %94 = math.exp %93 : vector<2x128xf32>
    %cst_41 = arith.constant 1.000000e+00 : f32
    %95 = vector.broadcast %cst_41 : f32 to vector<2x128xf32>
    %96 = arith.addf %95, %94 : vector<2x128xf32>
    %97 = arith.divf %95, %96 : vector<2x128xf32>
    %98 = arith.select %28, %92, %97 : vector<2x128xi1>, vector<2x128xf32>
    %99 = vector.extract_strided_slice %98 {offsets = [0, 0], sizes = [2, 32], strides = [1, 1]} : vector<2x128xf32> to vector<2x32xf32>
    %100 = vector.extract_strided_slice %98 {offsets = [0, 32], sizes = [2, 32], strides = [1, 1]} : vector<2x128xf32> to vector<2x32xf32>
    %101 = vector.extract_strided_slice %98 {offsets = [0, 64], sizes = [2, 32], strides = [1, 1]} : vector<2x128xf32> to vector<2x32xf32>
    %102 = vector.extract_strided_slice %98 {offsets = [0, 96], sizes = [2, 32], strides = [1, 1]} : vector<2x128xf32> to vector<2x32xf32>
    %103 = arith.mulf %100, %45 : vector<2x32xf32>
    %104 = arith.mulf %99, %101 : vector<2x32xf32>
    %105 = arith.addf %103, %104 : vector<2x32xf32>
    %106 = math.tanh %105 : vector<2x32xf32>
    %107 = arith.mulf %102, %106 : vector<2x32xf32>
    %108 = vector.extract_strided_slice %33 {offsets = [4, 0], sizes = [2, 128], strides = [1, 1]} : vector<16x128xf32> to vector<2x128xf32>
    %109 = arith.truncf %85 : vector<2x32xf32> to vector<2x32xbf16>
    %cst_42 = arith.constant dense<0.000000e+00> : vector<2x128xf32>
    %110 = tpu.matmul %109, %19, %cst_42 {dimension_numbers = #tpu.dot_dimension_numbers<[1], [0], [0], [1], [0, 0, 1, 1], [], []>} : vector<2x32xbf16>, vector<32x128xbf16>, vector<2x128xf32> -> vector<2x128xf32>
    %111 = arith.addf %108, %110 : vector<2x128xf32>
    %112 = math.tanh %111 : vector<2x128xf32>
    %113 = arith.negf %111 : vector<2x128xf32>
    %114 = math.exp %113 : vector<2x128xf32>
    %cst_43 = arith.constant 1.000000e+00 : f32
    %115 = vector.broadcast %cst_43 : f32 to vector<2x128xf32>
    %116 = arith.addf %115, %114 : vector<2x128xf32>
    %117 = arith.divf %115, %116 : vector<2x128xf32>
    %118 = arith.select %28, %112, %117 : vector<2x128xi1>, vector<2x128xf32>
    %119 = vector.extract_strided_slice %118 {offsets = [0, 0], sizes = [2, 32], strides = [1, 1]} : vector<2x128xf32> to vector<2x32xf32>
    %120 = vector.extract_strided_slice %118 {offsets = [0, 32], sizes = [2, 32], strides = [1, 1]} : vector<2x128xf32> to vector<2x32xf32>
    %121 = vector.extract_strided_slice %118 {offsets = [0, 64], sizes = [2, 32], strides = [1, 1]} : vector<2x128xf32> to vector<2x32xf32>
    %122 = vector.extract_strided_slice %118 {offsets = [0, 96], sizes = [2, 32], strides = [1, 1]} : vector<2x128xf32> to vector<2x32xf32>
    %123 = arith.mulf %120, %83 : vector<2x32xf32>
    %124 = arith.mulf %119, %121 : vector<2x32xf32>
    %125 = arith.addf %123, %124 : vector<2x32xf32>
    %126 = math.tanh %125 : vector<2x32xf32>
    %127 = arith.mulf %122, %126 : vector<2x32xf32>
    %128 = arith.truncf %85 : vector<2x32xf32> to vector<2x32xbf16>
    %cst_44 = arith.constant dense<0.000000e+00> : vector<2x128xf32>
    %129 = tpu.matmul %128, %16, %cst_44 {dimension_numbers = #tpu.dot_dimension_numbers<[1], [0], [0], [1], [0, 0, 1, 1], [], []>} : vector<2x32xbf16>, vector<32x128xbf16>, vector<2x128xf32> -> vector<2x128xf32>
    %130 = arith.truncf %107 : vector<2x32xf32> to vector<2x32xbf16>
    %cst_45 = arith.constant dense<0.000000e+00> : vector<2x128xf32>
    %131 = tpu.matmul %130, %22, %cst_45 {dimension_numbers = #tpu.dot_dimension_numbers<[1], [0], [0], [1], [0, 0, 1, 1], [], []>} : vector<2x32xbf16>, vector<32x128xbf16>, vector<2x128xf32> -> vector<2x128xf32>
    %132 = arith.addf %129, %131 : vector<2x128xf32>
    %133 = arith.addf %132, %37 : vector<2x128xf32>
    %134 = math.tanh %133 : vector<2x128xf32>
    %135 = arith.negf %133 : vector<2x128xf32>
    %136 = math.exp %135 : vector<2x128xf32>
    %cst_46 = arith.constant 1.000000e+00 : f32
    %137 = vector.broadcast %cst_46 : f32 to vector<2x128xf32>
    %138 = arith.addf %137, %136 : vector<2x128xf32>
    %139 = arith.divf %137, %138 : vector<2x128xf32>
    %140 = arith.select %28, %134, %139 : vector<2x128xi1>, vector<2x128xf32>
    %141 = vector.extract_strided_slice %140 {offsets = [0, 0], sizes = [2, 32], strides = [1, 1]} : vector<2x128xf32> to vector<2x32xf32>
    %142 = vector.extract_strided_slice %140 {offsets = [0, 32], sizes = [2, 32], strides = [1, 1]} : vector<2x128xf32> to vector<2x32xf32>
    %143 = vector.extract_strided_slice %140 {offsets = [0, 64], sizes = [2, 32], strides = [1, 1]} : vector<2x128xf32> to vector<2x32xf32>
    %144 = vector.extract_strided_slice %140 {offsets = [0, 96], sizes = [2, 32], strides = [1, 1]} : vector<2x128xf32> to vector<2x32xf32>
    %145 = arith.mulf %142, %105 : vector<2x32xf32>
    %146 = arith.mulf %141, %143 : vector<2x32xf32>
    %147 = arith.addf %145, %146 : vector<2x32xf32>
    %148 = math.tanh %147 : vector<2x32xf32>
    %149 = arith.mulf %144, %148 : vector<2x32xf32>
    %150 = vector.extract_strided_slice %33 {offsets = [6, 0], sizes = [2, 128], strides = [1, 1]} : vector<16x128xf32> to vector<2x128xf32>
    %151 = arith.truncf %127 : vector<2x32xf32> to vector<2x32xbf16>
    %cst_47 = arith.constant dense<0.000000e+00> : vector<2x128xf32>
    %152 = tpu.matmul %151, %19, %cst_47 {dimension_numbers = #tpu.dot_dimension_numbers<[1], [0], [0], [1], [0, 0, 1, 1], [], []>} : vector<2x32xbf16>, vector<32x128xbf16>, vector<2x128xf32> -> vector<2x128xf32>
    %153 = arith.addf %150, %152 : vector<2x128xf32>
    %154 = math.tanh %153 : vector<2x128xf32>
    %155 = arith.negf %153 : vector<2x128xf32>
    %156 = math.exp %155 : vector<2x128xf32>
    %cst_48 = arith.constant 1.000000e+00 : f32
    %157 = vector.broadcast %cst_48 : f32 to vector<2x128xf32>
    %158 = arith.addf %157, %156 : vector<2x128xf32>
    %159 = arith.divf %157, %158 : vector<2x128xf32>
    %160 = arith.select %28, %154, %159 : vector<2x128xi1>, vector<2x128xf32>
    %161 = vector.extract_strided_slice %160 {offsets = [0, 0], sizes = [2, 32], strides = [1, 1]} : vector<2x128xf32> to vector<2x32xf32>
    %162 = vector.extract_strided_slice %160 {offsets = [0, 32], sizes = [2, 32], strides = [1, 1]} : vector<2x128xf32> to vector<2x32xf32>
    %163 = vector.extract_strided_slice %160 {offsets = [0, 64], sizes = [2, 32], strides = [1, 1]} : vector<2x128xf32> to vector<2x32xf32>
    %164 = vector.extract_strided_slice %160 {offsets = [0, 96], sizes = [2, 32], strides = [1, 1]} : vector<2x128xf32> to vector<2x32xf32>
    %165 = arith.mulf %162, %125 : vector<2x32xf32>
    %166 = arith.mulf %161, %163 : vector<2x32xf32>
    %167 = arith.addf %165, %166 : vector<2x32xf32>
    %168 = math.tanh %167 : vector<2x32xf32>
    %169 = arith.mulf %164, %168 : vector<2x32xf32>
    %170 = arith.truncf %127 : vector<2x32xf32> to vector<2x32xbf16>
    %cst_49 = arith.constant dense<0.000000e+00> : vector<2x128xf32>
    %171 = tpu.matmul %170, %16, %cst_49 {dimension_numbers = #tpu.dot_dimension_numbers<[1], [0], [0], [1], [0, 0, 1, 1], [], []>} : vector<2x32xbf16>, vector<32x128xbf16>, vector<2x128xf32> -> vector<2x128xf32>
    %172 = arith.truncf %149 : vector<2x32xf32> to vector<2x32xbf16>
    %cst_50 = arith.constant dense<0.000000e+00> : vector<2x128xf32>
    %173 = tpu.matmul %172, %22, %cst_50 {dimension_numbers = #tpu.dot_dimension_numbers<[1], [0], [0], [1], [0, 0, 1, 1], [], []>} : vector<2x32xbf16>, vector<32x128xbf16>, vector<2x128xf32> -> vector<2x128xf32>
    %174 = arith.addf %171, %173 : vector<2x128xf32>
    %175 = arith.addf %174, %37 : vector<2x128xf32>
    %176 = math.tanh %175 : vector<2x128xf32>
    %177 = arith.negf %175 : vector<2x128xf32>
    %178 = math.exp %177 : vector<2x128xf32>
    %cst_51 = arith.constant 1.000000e+00 : f32
    %179 = vector.broadcast %cst_51 : f32 to vector<2x128xf32>
    %180 = arith.addf %179, %178 : vector<2x128xf32>
    %181 = arith.divf %179, %180 : vector<2x128xf32>
    %182 = arith.select %28, %176, %181 : vector<2x128xi1>, vector<2x128xf32>
    %183 = vector.extract_strided_slice %182 {offsets = [0, 0], sizes = [2, 32], strides = [1, 1]} : vector<2x128xf32> to vector<2x32xf32>
    %184 = vector.extract_strided_slice %182 {offsets = [0, 32], sizes = [2, 32], strides = [1, 1]} : vector<2x128xf32> to vector<2x32xf32>
    %185 = vector.extract_strided_slice %182 {offsets = [0, 64], sizes = [2, 32], strides = [1, 1]} : vector<2x128xf32> to vector<2x32xf32>
    %186 = vector.extract_strided_slice %182 {offsets = [0, 96], sizes = [2, 32], strides = [1, 1]} : vector<2x128xf32> to vector<2x32xf32>
    %187 = arith.mulf %184, %147 : vector<2x32xf32>
    %188 = arith.mulf %183, %185 : vector<2x32xf32>
    %189 = arith.addf %187, %188 : vector<2x32xf32>
    %190 = math.tanh %189 : vector<2x32xf32>
    %191 = arith.mulf %186, %190 : vector<2x32xf32>
    %192 = vector.extract_strided_slice %33 {offsets = [8, 0], sizes = [2, 128], strides = [1, 1]} : vector<16x128xf32> to vector<2x128xf32>
    %193 = arith.truncf %169 : vector<2x32xf32> to vector<2x32xbf16>
    %cst_52 = arith.constant dense<0.000000e+00> : vector<2x128xf32>
    %194 = tpu.matmul %193, %19, %cst_52 {dimension_numbers = #tpu.dot_dimension_numbers<[1], [0], [0], [1], [0, 0, 1, 1], [], []>} : vector<2x32xbf16>, vector<32x128xbf16>, vector<2x128xf32> -> vector<2x128xf32>
    %195 = arith.addf %192, %194 : vector<2x128xf32>
    %196 = math.tanh %195 : vector<2x128xf32>
    %197 = arith.negf %195 : vector<2x128xf32>
    %198 = math.exp %197 : vector<2x128xf32>
    %cst_53 = arith.constant 1.000000e+00 : f32
    %199 = vector.broadcast %cst_53 : f32 to vector<2x128xf32>
    %200 = arith.addf %199, %198 : vector<2x128xf32>
    %201 = arith.divf %199, %200 : vector<2x128xf32>
    %202 = arith.select %28, %196, %201 : vector<2x128xi1>, vector<2x128xf32>
    %203 = vector.extract_strided_slice %202 {offsets = [0, 0], sizes = [2, 32], strides = [1, 1]} : vector<2x128xf32> to vector<2x32xf32>
    %204 = vector.extract_strided_slice %202 {offsets = [0, 32], sizes = [2, 32], strides = [1, 1]} : vector<2x128xf32> to vector<2x32xf32>
    %205 = vector.extract_strided_slice %202 {offsets = [0, 64], sizes = [2, 32], strides = [1, 1]} : vector<2x128xf32> to vector<2x32xf32>
    %206 = vector.extract_strided_slice %202 {offsets = [0, 96], sizes = [2, 32], strides = [1, 1]} : vector<2x128xf32> to vector<2x32xf32>
    %207 = arith.mulf %204, %167 : vector<2x32xf32>
    %208 = arith.mulf %203, %205 : vector<2x32xf32>
    %209 = arith.addf %207, %208 : vector<2x32xf32>
    %210 = math.tanh %209 : vector<2x32xf32>
    %211 = arith.mulf %206, %210 : vector<2x32xf32>
    %212 = arith.truncf %169 : vector<2x32xf32> to vector<2x32xbf16>
    %cst_54 = arith.constant dense<0.000000e+00> : vector<2x128xf32>
    %213 = tpu.matmul %212, %16, %cst_54 {dimension_numbers = #tpu.dot_dimension_numbers<[1], [0], [0], [1], [0, 0, 1, 1], [], []>} : vector<2x32xbf16>, vector<32x128xbf16>, vector<2x128xf32> -> vector<2x128xf32>
    %214 = arith.truncf %191 : vector<2x32xf32> to vector<2x32xbf16>
    %cst_55 = arith.constant dense<0.000000e+00> : vector<2x128xf32>
    %215 = tpu.matmul %214, %22, %cst_55 {dimension_numbers = #tpu.dot_dimension_numbers<[1], [0], [0], [1], [0, 0, 1, 1], [], []>} : vector<2x32xbf16>, vector<32x128xbf16>, vector<2x128xf32> -> vector<2x128xf32>
    %216 = arith.addf %213, %215 : vector<2x128xf32>
    %217 = arith.addf %216, %37 : vector<2x128xf32>
    %218 = math.tanh %217 : vector<2x128xf32>
    %219 = arith.negf %217 : vector<2x128xf32>
    %220 = math.exp %219 : vector<2x128xf32>
    %cst_56 = arith.constant 1.000000e+00 : f32
    %221 = vector.broadcast %cst_56 : f32 to vector<2x128xf32>
    %222 = arith.addf %221, %220 : vector<2x128xf32>
    %223 = arith.divf %221, %222 : vector<2x128xf32>
    %224 = arith.select %28, %218, %223 : vector<2x128xi1>, vector<2x128xf32>
    %225 = vector.extract_strided_slice %224 {offsets = [0, 0], sizes = [2, 32], strides = [1, 1]} : vector<2x128xf32> to vector<2x32xf32>
    %226 = vector.extract_strided_slice %224 {offsets = [0, 32], sizes = [2, 32], strides = [1, 1]} : vector<2x128xf32> to vector<2x32xf32>
    %227 = vector.extract_strided_slice %224 {offsets = [0, 64], sizes = [2, 32], strides = [1, 1]} : vector<2x128xf32> to vector<2x32xf32>
    %228 = vector.extract_strided_slice %224 {offsets = [0, 96], sizes = [2, 32], strides = [1, 1]} : vector<2x128xf32> to vector<2x32xf32>
    %229 = arith.mulf %226, %189 : vector<2x32xf32>
    %230 = arith.mulf %225, %227 : vector<2x32xf32>
    %231 = arith.addf %229, %230 : vector<2x32xf32>
    %232 = math.tanh %231 : vector<2x32xf32>
    %233 = arith.mulf %228, %232 : vector<2x32xf32>
    %234 = vector.extract_strided_slice %33 {offsets = [10, 0], sizes = [2, 128], strides = [1, 1]} : vector<16x128xf32> to vector<2x128xf32>
    %235 = arith.truncf %211 : vector<2x32xf32> to vector<2x32xbf16>
    %cst_57 = arith.constant dense<0.000000e+00> : vector<2x128xf32>
    %236 = tpu.matmul %235, %19, %cst_57 {dimension_numbers = #tpu.dot_dimension_numbers<[1], [0], [0], [1], [0, 0, 1, 1], [], []>} : vector<2x32xbf16>, vector<32x128xbf16>, vector<2x128xf32> -> vector<2x128xf32>
    %237 = arith.addf %234, %236 : vector<2x128xf32>
    %238 = math.tanh %237 : vector<2x128xf32>
    %239 = arith.negf %237 : vector<2x128xf32>
    %240 = math.exp %239 : vector<2x128xf32>
    %cst_58 = arith.constant 1.000000e+00 : f32
    %241 = vector.broadcast %cst_58 : f32 to vector<2x128xf32>
    %242 = arith.addf %241, %240 : vector<2x128xf32>
    %243 = arith.divf %241, %242 : vector<2x128xf32>
    %244 = arith.select %28, %238, %243 : vector<2x128xi1>, vector<2x128xf32>
    %245 = vector.extract_strided_slice %244 {offsets = [0, 0], sizes = [2, 32], strides = [1, 1]} : vector<2x128xf32> to vector<2x32xf32>
    %246 = vector.extract_strided_slice %244 {offsets = [0, 32], sizes = [2, 32], strides = [1, 1]} : vector<2x128xf32> to vector<2x32xf32>
    %247 = vector.extract_strided_slice %244 {offsets = [0, 64], sizes = [2, 32], strides = [1, 1]} : vector<2x128xf32> to vector<2x32xf32>
    %248 = vector.extract_strided_slice %244 {offsets = [0, 96], sizes = [2, 32], strides = [1, 1]} : vector<2x128xf32> to vector<2x32xf32>
    %249 = arith.mulf %246, %209 : vector<2x32xf32>
    %250 = arith.mulf %245, %247 : vector<2x32xf32>
    %251 = arith.addf %249, %250 : vector<2x32xf32>
    %252 = math.tanh %251 : vector<2x32xf32>
    %253 = arith.mulf %248, %252 : vector<2x32xf32>
    %254 = arith.truncf %211 : vector<2x32xf32> to vector<2x32xbf16>
    %cst_59 = arith.constant dense<0.000000e+00> : vector<2x128xf32>
    %255 = tpu.matmul %254, %16, %cst_59 {dimension_numbers = #tpu.dot_dimension_numbers<[1], [0], [0], [1], [0, 0, 1, 1], [], []>} : vector<2x32xbf16>, vector<32x128xbf16>, vector<2x128xf32> -> vector<2x128xf32>
    %256 = arith.truncf %233 : vector<2x32xf32> to vector<2x32xbf16>
    %cst_60 = arith.constant dense<0.000000e+00> : vector<2x128xf32>
    %257 = tpu.matmul %256, %22, %cst_60 {dimension_numbers = #tpu.dot_dimension_numbers<[1], [0], [0], [1], [0, 0, 1, 1], [], []>} : vector<2x32xbf16>, vector<32x128xbf16>, vector<2x128xf32> -> vector<2x128xf32>
    %258 = arith.addf %255, %257 : vector<2x128xf32>
    %259 = arith.addf %258, %37 : vector<2x128xf32>
    %260 = math.tanh %259 : vector<2x128xf32>
    %261 = arith.negf %259 : vector<2x128xf32>
    %262 = math.exp %261 : vector<2x128xf32>
    %cst_61 = arith.constant 1.000000e+00 : f32
    %263 = vector.broadcast %cst_61 : f32 to vector<2x128xf32>
    %264 = arith.addf %263, %262 : vector<2x128xf32>
    %265 = arith.divf %263, %264 : vector<2x128xf32>
    %266 = arith.select %28, %260, %265 : vector<2x128xi1>, vector<2x128xf32>
    %267 = vector.extract_strided_slice %266 {offsets = [0, 0], sizes = [2, 32], strides = [1, 1]} : vector<2x128xf32> to vector<2x32xf32>
    %268 = vector.extract_strided_slice %266 {offsets = [0, 32], sizes = [2, 32], strides = [1, 1]} : vector<2x128xf32> to vector<2x32xf32>
    %269 = vector.extract_strided_slice %266 {offsets = [0, 64], sizes = [2, 32], strides = [1, 1]} : vector<2x128xf32> to vector<2x32xf32>
    %270 = vector.extract_strided_slice %266 {offsets = [0, 96], sizes = [2, 32], strides = [1, 1]} : vector<2x128xf32> to vector<2x32xf32>
    %271 = arith.mulf %268, %231 : vector<2x32xf32>
    %272 = arith.mulf %267, %269 : vector<2x32xf32>
    %273 = arith.addf %271, %272 : vector<2x32xf32>
    %274 = math.tanh %273 : vector<2x32xf32>
    %275 = arith.mulf %270, %274 : vector<2x32xf32>
    %276 = vector.extract_strided_slice %33 {offsets = [12, 0], sizes = [2, 128], strides = [1, 1]} : vector<16x128xf32> to vector<2x128xf32>
    %277 = arith.truncf %253 : vector<2x32xf32> to vector<2x32xbf16>
    %cst_62 = arith.constant dense<0.000000e+00> : vector<2x128xf32>
    %278 = tpu.matmul %277, %19, %cst_62 {dimension_numbers = #tpu.dot_dimension_numbers<[1], [0], [0], [1], [0, 0, 1, 1], [], []>} : vector<2x32xbf16>, vector<32x128xbf16>, vector<2x128xf32> -> vector<2x128xf32>
    %279 = arith.addf %276, %278 : vector<2x128xf32>
    %280 = math.tanh %279 : vector<2x128xf32>
    %281 = arith.negf %279 : vector<2x128xf32>
    %282 = math.exp %281 : vector<2x128xf32>
    %cst_63 = arith.constant 1.000000e+00 : f32
    %283 = vector.broadcast %cst_63 : f32 to vector<2x128xf32>
    %284 = arith.addf %283, %282 : vector<2x128xf32>
    %285 = arith.divf %283, %284 : vector<2x128xf32>
    %286 = arith.select %28, %280, %285 : vector<2x128xi1>, vector<2x128xf32>
    %287 = vector.extract_strided_slice %286 {offsets = [0, 0], sizes = [2, 32], strides = [1, 1]} : vector<2x128xf32> to vector<2x32xf32>
    %288 = vector.extract_strided_slice %286 {offsets = [0, 32], sizes = [2, 32], strides = [1, 1]} : vector<2x128xf32> to vector<2x32xf32>
    %289 = vector.extract_strided_slice %286 {offsets = [0, 64], sizes = [2, 32], strides = [1, 1]} : vector<2x128xf32> to vector<2x32xf32>
    %290 = vector.extract_strided_slice %286 {offsets = [0, 96], sizes = [2, 32], strides = [1, 1]} : vector<2x128xf32> to vector<2x32xf32>
    %291 = arith.mulf %288, %251 : vector<2x32xf32>
    %292 = arith.mulf %287, %289 : vector<2x32xf32>
    %293 = arith.addf %291, %292 : vector<2x32xf32>
    %294 = math.tanh %293 : vector<2x32xf32>
    %295 = arith.mulf %290, %294 : vector<2x32xf32>
    %296 = arith.truncf %253 : vector<2x32xf32> to vector<2x32xbf16>
    %cst_64 = arith.constant dense<0.000000e+00> : vector<2x128xf32>
    %297 = tpu.matmul %296, %16, %cst_64 {dimension_numbers = #tpu.dot_dimension_numbers<[1], [0], [0], [1], [0, 0, 1, 1], [], []>} : vector<2x32xbf16>, vector<32x128xbf16>, vector<2x128xf32> -> vector<2x128xf32>
    %298 = arith.truncf %275 : vector<2x32xf32> to vector<2x32xbf16>
    %cst_65 = arith.constant dense<0.000000e+00> : vector<2x128xf32>
    %299 = tpu.matmul %298, %22, %cst_65 {dimension_numbers = #tpu.dot_dimension_numbers<[1], [0], [0], [1], [0, 0, 1, 1], [], []>} : vector<2x32xbf16>, vector<32x128xbf16>, vector<2x128xf32> -> vector<2x128xf32>
    %300 = arith.addf %297, %299 : vector<2x128xf32>
    %301 = arith.addf %300, %37 : vector<2x128xf32>
    %302 = math.tanh %301 : vector<2x128xf32>
    %303 = arith.negf %301 : vector<2x128xf32>
    %304 = math.exp %303 : vector<2x128xf32>
    %cst_66 = arith.constant 1.000000e+00 : f32
    %305 = vector.broadcast %cst_66 : f32 to vector<2x128xf32>
    %306 = arith.addf %305, %304 : vector<2x128xf32>
    %307 = arith.divf %305, %306 : vector<2x128xf32>
    %308 = arith.select %28, %302, %307 : vector<2x128xi1>, vector<2x128xf32>
    %309 = vector.extract_strided_slice %308 {offsets = [0, 0], sizes = [2, 32], strides = [1, 1]} : vector<2x128xf32> to vector<2x32xf32>
    %310 = vector.extract_strided_slice %308 {offsets = [0, 32], sizes = [2, 32], strides = [1, 1]} : vector<2x128xf32> to vector<2x32xf32>
    %311 = vector.extract_strided_slice %308 {offsets = [0, 64], sizes = [2, 32], strides = [1, 1]} : vector<2x128xf32> to vector<2x32xf32>
    %312 = vector.extract_strided_slice %308 {offsets = [0, 96], sizes = [2, 32], strides = [1, 1]} : vector<2x128xf32> to vector<2x32xf32>
    %313 = arith.mulf %310, %273 : vector<2x32xf32>
    %314 = arith.mulf %309, %311 : vector<2x32xf32>
    %315 = arith.addf %313, %314 : vector<2x32xf32>
    %316 = math.tanh %315 : vector<2x32xf32>
    %317 = arith.mulf %312, %316 : vector<2x32xf32>
    %318 = vector.extract_strided_slice %33 {offsets = [14, 0], sizes = [2, 128], strides = [1, 1]} : vector<16x128xf32> to vector<2x128xf32>
    %319 = arith.truncf %295 : vector<2x32xf32> to vector<2x32xbf16>
    %cst_67 = arith.constant dense<0.000000e+00> : vector<2x128xf32>
    %320 = tpu.matmul %319, %19, %cst_67 {dimension_numbers = #tpu.dot_dimension_numbers<[1], [0], [0], [1], [0, 0, 1, 1], [], []>} : vector<2x32xbf16>, vector<32x128xbf16>, vector<2x128xf32> -> vector<2x128xf32>
    %321 = arith.addf %318, %320 : vector<2x128xf32>
    %322 = math.tanh %321 : vector<2x128xf32>
    %323 = arith.negf %321 : vector<2x128xf32>
    %324 = math.exp %323 : vector<2x128xf32>
    %cst_68 = arith.constant 1.000000e+00 : f32
    %325 = vector.broadcast %cst_68 : f32 to vector<2x128xf32>
    %326 = arith.addf %325, %324 : vector<2x128xf32>
    %327 = arith.divf %325, %326 : vector<2x128xf32>
    %328 = arith.select %28, %322, %327 : vector<2x128xi1>, vector<2x128xf32>
    %329 = vector.extract_strided_slice %328 {offsets = [0, 0], sizes = [2, 32], strides = [1, 1]} : vector<2x128xf32> to vector<2x32xf32>
    %330 = vector.extract_strided_slice %328 {offsets = [0, 32], sizes = [2, 32], strides = [1, 1]} : vector<2x128xf32> to vector<2x32xf32>
    %331 = vector.extract_strided_slice %328 {offsets = [0, 64], sizes = [2, 32], strides = [1, 1]} : vector<2x128xf32> to vector<2x32xf32>
    %332 = vector.extract_strided_slice %328 {offsets = [0, 96], sizes = [2, 32], strides = [1, 1]} : vector<2x128xf32> to vector<2x32xf32>
    %333 = arith.mulf %330, %293 : vector<2x32xf32>
    %334 = arith.mulf %329, %331 : vector<2x32xf32>
    %335 = arith.addf %333, %334 : vector<2x32xf32>
    %336 = math.tanh %335 : vector<2x32xf32>
    %337 = arith.mulf %332, %336 : vector<2x32xf32>
    %338 = arith.truncf %295 : vector<2x32xf32> to vector<2x32xbf16>
    %cst_69 = arith.constant dense<0.000000e+00> : vector<2x128xf32>
    %339 = tpu.matmul %338, %16, %cst_69 {dimension_numbers = #tpu.dot_dimension_numbers<[1], [0], [0], [1], [0, 0, 1, 1], [], []>} : vector<2x32xbf16>, vector<32x128xbf16>, vector<2x128xf32> -> vector<2x128xf32>
    %340 = arith.truncf %317 : vector<2x32xf32> to vector<2x32xbf16>
    %cst_70 = arith.constant dense<0.000000e+00> : vector<2x128xf32>
    %341 = tpu.matmul %340, %22, %cst_70 {dimension_numbers = #tpu.dot_dimension_numbers<[1], [0], [0], [1], [0, 0, 1, 1], [], []>} : vector<2x32xbf16>, vector<32x128xbf16>, vector<2x128xf32> -> vector<2x128xf32>
    %342 = arith.addf %339, %341 : vector<2x128xf32>
    %343 = arith.addf %342, %37 : vector<2x128xf32>
    %344 = math.tanh %343 : vector<2x128xf32>
    %345 = arith.negf %343 : vector<2x128xf32>
    %346 = math.exp %345 : vector<2x128xf32>
    %cst_71 = arith.constant 1.000000e+00 : f32
    %347 = vector.broadcast %cst_71 : f32 to vector<2x128xf32>
    %348 = arith.addf %347, %346 : vector<2x128xf32>
    %349 = arith.divf %347, %348 : vector<2x128xf32>
    %350 = arith.select %28, %344, %349 : vector<2x128xi1>, vector<2x128xf32>
    %351 = vector.extract_strided_slice %350 {offsets = [0, 0], sizes = [2, 32], strides = [1, 1]} : vector<2x128xf32> to vector<2x32xf32>
    %352 = vector.extract_strided_slice %350 {offsets = [0, 32], sizes = [2, 32], strides = [1, 1]} : vector<2x128xf32> to vector<2x32xf32>
    %353 = vector.extract_strided_slice %350 {offsets = [0, 64], sizes = [2, 32], strides = [1, 1]} : vector<2x128xf32> to vector<2x32xf32>
    %354 = vector.extract_strided_slice %350 {offsets = [0, 96], sizes = [2, 32], strides = [1, 1]} : vector<2x128xf32> to vector<2x32xf32>
    %355 = arith.mulf %352, %315 : vector<2x32xf32>
    %356 = arith.mulf %351, %353 : vector<2x32xf32>
    %357 = arith.addf %355, %356 : vector<2x32xf32>
    %358 = math.tanh %357 : vector<2x32xf32>
    %359 = arith.mulf %354, %358 : vector<2x32xf32>
    %360 = arith.truncf %337 : vector<2x32xf32> to vector<2x32xbf16>
    %cst_72 = arith.constant dense<0.000000e+00> : vector<2x128xf32>
    %361 = tpu.matmul %360, %16, %cst_72 {dimension_numbers = #tpu.dot_dimension_numbers<[1], [0], [0], [1], [0, 0, 1, 1], [], []>} : vector<2x32xbf16>, vector<32x128xbf16>, vector<2x128xf32> -> vector<2x128xf32>
    %362 = arith.truncf %359 : vector<2x32xf32> to vector<2x32xbf16>
    %cst_73 = arith.constant dense<0.000000e+00> : vector<2x128xf32>
    %363 = tpu.matmul %362, %22, %cst_73 {dimension_numbers = #tpu.dot_dimension_numbers<[1], [0], [0], [1], [0, 0, 1, 1], [], []>} : vector<2x32xbf16>, vector<32x128xbf16>, vector<2x128xf32> -> vector<2x128xf32>
    %364 = arith.addf %361, %363 : vector<2x128xf32>
    %365 = arith.addf %364, %37 : vector<2x128xf32>
    %366 = math.tanh %365 : vector<2x128xf32>
    %367 = arith.negf %365 : vector<2x128xf32>
    %368 = math.exp %367 : vector<2x128xf32>
    %cst_74 = arith.constant 1.000000e+00 : f32
    %369 = vector.broadcast %cst_74 : f32 to vector<2x128xf32>
    %370 = arith.addf %369, %368 : vector<2x128xf32>
    %371 = arith.divf %369, %370 : vector<2x128xf32>
    %372 = arith.select %28, %366, %371 : vector<2x128xi1>, vector<2x128xf32>
    %373 = vector.extract_strided_slice %372 {offsets = [0, 0], sizes = [2, 32], strides = [1, 1]} : vector<2x128xf32> to vector<2x32xf32>
    %374 = vector.extract_strided_slice %372 {offsets = [0, 32], sizes = [2, 32], strides = [1, 1]} : vector<2x128xf32> to vector<2x32xf32>
    %375 = vector.extract_strided_slice %372 {offsets = [0, 64], sizes = [2, 32], strides = [1, 1]} : vector<2x128xf32> to vector<2x32xf32>
    %376 = vector.extract_strided_slice %372 {offsets = [0, 96], sizes = [2, 32], strides = [1, 1]} : vector<2x128xf32> to vector<2x32xf32>
    %377 = arith.mulf %374, %357 : vector<2x32xf32>
    %378 = arith.mulf %373, %375 : vector<2x32xf32>
    %379 = arith.addf %377, %378 : vector<2x32xf32>
    %380 = math.tanh %379 : vector<2x32xf32>
    %381 = arith.mulf %376, %380 : vector<2x32xf32>
    %c0_75 = arith.constant 0 : index
    %c0_76 = arith.constant 0 : index
    %c0_77 = arith.constant 0 : index
    %382 = vector.load %arg9[%c0_75, %c0_76, %c0_77] : memref<2x2x32xf32, #tpu.memory_space<vmem>>, vector<1x2x32xf32>
    %383 = vector.shape_cast %382 : vector<1x2x32xf32> to vector<2x32xf32>
    %384 = vector.shape_cast %337 : vector<2x32xf32> to vector<1x2x32xf32>
    tpu.vector_store %arg9[%c0_75, %c0_76, %c0_77], %384 {strides = array<i32>} : memref<2x2x32xf32, #tpu.memory_space<vmem>>, vector<1x2x32xf32>,
    %c0_78 = arith.constant 0 : index
    %c0_79 = arith.constant 0 : index
    %c0_80 = arith.constant 0 : index
    %385 = vector.load %arg10[%c0_78, %c0_79, %c0_80] : memref<2x2x32xf32, #tpu.memory_space<vmem>>, vector<1x2x32xf32>
    %386 = vector.shape_cast %385 : vector<1x2x32xf32> to vector<2x32xf32>
    %387 = vector.shape_cast %335 : vector<2x32xf32> to vector<1x2x32xf32>
    tpu.vector_store %arg10[%c0_78, %c0_79, %c0_80], %387 {strides = array<i32>} : memref<2x2x32xf32, #tpu.memory_space<vmem>>, vector<1x2x32xf32>,
    %c1_81 = arith.constant 1 : index
    %c0_82 = arith.constant 0 : index
    %c0_83 = arith.constant 0 : index
    %388 = vector.load %arg9[%c1_81, %c0_82, %c0_83] : memref<2x2x32xf32, #tpu.memory_space<vmem>>, vector<1x2x32xf32>
    %389 = vector.shape_cast %388 : vector<1x2x32xf32> to vector<2x32xf32>
    %390 = vector.shape_cast %381 : vector<2x32xf32> to vector<1x2x32xf32>
    tpu.vector_store %arg9[%c1_81, %c0_82, %c0_83], %390 {strides = array<i32>} : memref<2x2x32xf32, #tpu.memory_space<vmem>>, vector<1x2x32xf32>,
    %c1_84 = arith.constant 1 : index
    %c0_85 = arith.constant 0 : index
    %c0_86 = arith.constant 0 : index
    %391 = vector.load %arg10[%c1_84, %c0_85, %c0_86] : memref<2x2x32xf32, #tpu.memory_space<vmem>>, vector<1x2x32xf32>
    %392 = vector.shape_cast %391 : vector<1x2x32xf32> to vector<2x32xf32>
    %393 = vector.shape_cast %379 : vector<2x32xf32> to vector<1x2x32xf32>
    tpu.vector_store %arg10[%c1_84, %c0_85, %c0_86], %393 {strides = array<i32>} : memref<2x2x32xf32, #tpu.memory_space<vmem>>, vector<1x2x32xf32>,
    %394 = tpu.concatenate %107, %149, %191, %233, %275, %317, %359, %381 in 0 : vector<2x32xf32>, vector<2x32xf32>, vector<2x32xf32>, vector<2x32xf32>, vector<2x32xf32>, vector<2x32xf32>, vector<2x32xf32>, vector<2x32xf32> -> vector<16x32xf32>
    %395 = arith.truncf %394 : vector<16x32xf32> to vector<16x32xbf16>
    %c0_87 = arith.constant 0 : index
    %c0_88 = arith.constant 0 : index
    %396 = vector.load %arg6[%c0_87, %c0_88] : memref<32x128xbf16, #tpu.memory_space<vmem>>, vector<32x128xbf16>
    %cst_89 = arith.constant dense<0.000000e+00> : vector<16x128xf32>
    %397 = tpu.matmul %395, %396, %cst_89 {dimension_numbers = #tpu.dot_dimension_numbers<[1], [0], [0], [1], [0, 0, 1, 1], [], []>} : vector<16x32xbf16>, vector<32x128xbf16>, vector<16x128xf32> -> vector<16x128xf32>
    %c0_90 = arith.constant 0 : index
    %c0_91 = arith.constant 0 : index
    %398 = vector.load %arg7[%c0_90, %c0_91] : memref<1x128xf32, #tpu.memory_space<vmem>>, vector<1x128xf32>
    %399 = vector.broadcast %398 : vector<1x128xf32> to vector<16x128xf32>
    %400 = arith.addf %397, %399 : vector<16x128xf32>
    %c0_92 = arith.constant 0 : index
    %c0_93 = arith.constant 0 : index
    %401 = vector.load %arg8[%c0_92, %c0_93] : memref<16x128xf32, #tpu.memory_space<vmem>>, vector<16x128xf32>
    tpu.vector_store %arg8[%c0_92, %c0_93], %400 {strides = array<i32>} : memref<16x128xf32, #tpu.memory_space<vmem>>, vector<16x128xf32>,
    return
  }
}

</mosaic_0001>

<bundles_post_ra>
// kernel: rnn_model_forward.1
= control target key start
LH: loop header
LB: loop body
LE: loop exit
PB: predicated region body
PF: predicated region fallthrough
CT: control target
= control target key end

     0   :  { %16 = vsyncpa [#allocation3], 0  ;;  %v2629_v1 = vmov 0   ;;  %v2630_v2 = vmov 0.0   ;;  %vm2631_vm0 = vmmov 0   ;;  %s3241_s0 = inlined_call_operand.vmem [shape: s32[16,1], index: 0, kind: input, shape index: {}]   ;;  %s3242_s1 = inlined_call_operand.vmem [shape: bf16[128,32], index: 1, kind: input, shape index: {}]   ;;  %s3243_s2 = inlined_call_operand.vmem [shape: f32[2,2,32], index: 2, kind: input, shape index: {}]   ;;  %s3244_s3 = inlined_call_operand.vmem [shape: f32[2,2,32], index: 3, kind: input, shape index: {}]   ;;  %s3245_s4 = inlined_call_operand.vmem [shape: bf16[2,64,128], index: 4, kind: input, shape index: {}]   ;;  %s3246_s5 = inlined_call_operand.vmem [shape: f32[2,1,128], index: 5, kind: input, shape index: {}]   ;;  %s3247_s6 = inlined_call_operand.vmem [shape: bf16[32,128], index: 6, kind: input, shape index: {}]   ;;  %s3248_s7 = inlined_call_operand.vmem [shape: f32[1,128], index: 7, kind: input, shape index: {}]   ;;  %s3249_s8 = inlined_call_operand.hbm [shape: f32[16,128], index: 8, kind: output, shape index: {0}]   ;;  %s3250_s9 = inlined_call_operand.hbm [shape: f32[2,2,32], index: 9, kind: output, shape index: {1}]   ;;  %s3251_s10 = inlined_call_operand.hbm [shape: f32[2,2,32], index: 10, kind: output, shape index: {2}]  }
   0x1   :  { %v35_v0 = vld [vmem:[%s3241_s0] sm:$0xff]  ;;  %2406 = vset.pattern.permute.xlu0 %v2629_v1  ;;  %2165 = vmatprep.subr.bf16.mxu0 %v2630_v2  ;;  %v36_v4 = vld [vmem:[%s3241_s0 + $0x8] sm:$0xff]  ;;  %v2409_v6 = vld [vmem:[%s3242_s1 + $0x10] sm:$0xff]  }
   0x2   :  { %v2407_v3 = vld [vmem:[%s3242_s1] sm:$0xff]   ;;  %40 = vperm.xlu0 %2406, %v35_v0   ;;  %2185 = vmatprep.subr.bf16.mxu1 %v2630_v2  ;;  %v2408_v5 = vld [vmem:[%s3242_s1 + $0x8] sm:$0xff]   ;;  %v2410_v7 = vld [vmem:[%s3242_s1 + $0x18] sm:$0xff]  }
   0x3   :  { %2166 = vmatpush3.bf16.msra.mxu0 %v2407_v3  ;;  %2181 = vmatprep.mubr.msk.bf16.mxu0 %vm2631_vm0, %v2630_v2  ;;  %v2415_v8 = vld [vmem:[%s3245_s4] sm:$0xff]  }
   0x4   :  { %2167 = vmatprep.subr.bf16.mxu0 %v2630_v2  ;;  %2189 = vmatprep.mubr.msk.bf16.mxu1 %vm2631_vm0, %v2630_v2  ;;  %v2411_v9 = vld [vmem:[%s3242_s1 + $0x20] sm:$0xff]  }
   0x5   :  { %2186 = vmatpush3.bf16.msra.mxu1 %v2415_v8 }
   0x6   :  { %43 = vperm.xlu0 %2406, %v36_v4   ;;  %2187 = vmatprep.subr.bf16.mxu1 %v2630_v2 }
   0x7   :  { %2168 = vmatpush3.bf16.msra.mxu0 %v2408_v5 }
   0x8   :  { %2169 = vmatprep.subr.bf16.mxu0 %v2630_v2 }
   0xb   :  { %2170 = vmatpush3.bf16.msra.mxu0 %v2409_v6 }
   0xc   :  { %2171 = vmatprep.subr.bf16.mxu0 %v2630_v2 }
   0xf   :  { %2172 = vmatpush3.bf16.msra.mxu0 %v2410_v7 }
  0x10   :  { %2173 = vmatprep.subr.bf16.mxu0 %v2630_v2 }
  0x11   :  { %17 = vsyncpa [#allocation5], 0  ;;  %v2412_v10 = vld [vmem:[%s3242_s1 + $0x28] sm:$0xff]   ;;  %v2413_v11 = vld [vmem:[%s3242_s1 + $0x30] sm:$0xff]   ;;  %v37_v13 = vlaneseq  ;;  %v2632_v17 = vmov 1.0|1.0  }
  0x12   :  { %v2414_v12 = vld [vmem:[%s3242_s1 + $0x38] sm:$0xff]   ;;  %v2416_v18 = vld [vmem:[%s3245_s4 + $0x8] sm:$0xff]   ;;  %vm195_vm4 = vcmask 261120   ;;  %v2754_v22 = vld [vmem:[%s3245_s4 + $0x10] sm:$0xff]   ;;  %s2633_s0 = smov 64   ;;  %s2634_s25 = smov 32  }
  0x13   :  { %2174 = vmatpush3.bf16.msra.mxu0 %v2411_v9  ;;  %v38_v15 = vand.u32 127, %v37_v13  ;;  %2188 = vmatpush3.bf16.msra.mxu1 %v2416_v18  ;;  %v2761_v25 = vld [vmem:[%s3245_s4 + $0x18] sm:$0xff]   ;;  %v248_v26 = vld [vmem:[%s3243_s2] sm:$0x3]  ;;  %v2810_v55 = vld [vmem:[%s3245_s4 + $0x28] sm:$0xff]   ;;  %vm1873_vm8 = vcmask 1041408  }
  0x14   :  { %2175 = vmatprep.subr.bf16.mxu0 %v2630_v2  ;;  %2193 = vmatprep.subr.bf16.mxu1 %v2630_v2  ;;  %v254_v27 = vpack.c.bf16 %v248_v26, %v248_v26  ;;  %v2020_v30 = vld [vmem:[%s3246_s5] ss:$0 sm:$0xff]  ;;  %v2820_v60 = vld [vmem:[%s3245_s4 + $0x30] sm:$0xff]   ;;  %v2828_v62 = vld [vmem:[%s3245_s4 + $0x38] sm:$0xff]   ;;  %vm1875_vm9 = vcmask 1043456   ;;  %vm1877_vm10 = vcmask 1045504  }
  0x15   :  { %vm173_vm5 = vcmp.ge.s32.totalorder %v38_v15, 64  ;;  %vm174_vm6 = vcmp.lt.s32.totalorder %v38_v15, 96  ;;  %v251_v47 = vld [vmem:[%s3244_s3] sm:$0x3]  ;;  %v2026_v63 = vld [vmem:[%s3243_s2 + $0x2] sm:$0x3] }
  0x16   :  { %vm2786_vm7 = vmand %vm173_vm5, %vm174_vm6  ;;  %v2804_v54 = vld [vmem:[%s3245_s4 + $0x20] sm:$0xff]   ;;  %v419_v0 = vpack.c.bf16 %v2026_v63, %v2026_v63  ;;  %v2424_v43 = vld [vmem:[%s3247_s6 + $0x8] sm:$0xff]   ;;  %s2635_s12 = smov 96   ;;  %vm1836_vm11 = vcmask 261126   ;;  %vm1848_vm12 = vcmask 254976  }
  0x17   :  { %2176 = vmatpush3.bf16.msra.mxu0 %v2412_v10  ;;  %v2855_v13 = vld [vmem:[%s3246_s5 + $0x1] ss:$0 sm:$0xff] }
  0x18   :  { %2177 = vmatprep.subr.bf16.mxu0 %v2630_v2 }
  0x1b   :  { %2178 = vmatpush3.bf16.msra.mxu0 %v2413_v11 }
  0x1c   :  { %2179 = vmatprep.subr.bf16.mxu0 %v2630_v2 }
  0x1f   :  { %2180 = vmatpush3.bf16.msra.mxu0 %v2414_v12 }
  0x20   :  { %2217 = vmatprep.subr.bf16.mxu0 %v2630_v2 }
  0x81   :  { %v41_v14 = vpop.permute.xlu0 %40 }
  0x82   :  { %vm45_vm1 = vcmp.eq.s32.totalorder %v41_v14, %v38_v15 }
  0x85   :  { %v44_v16 = vpop.permute.xlu0 %43 }
  0x86   :  { %vm46_vm2 = vcmp.eq.s32.totalorder %v44_v16, %v38_v15 }
  0x87   :  { %vm2010_vm3 = vmpackc.low %vm46_vm2, %vm45_vm1 }
  0x88   :  { %2182 = vmatmul.mubr.msk.bf16.vlgmr.msra.gmra.mrb[0].mxu0 %vm2010_vm3, %v2632_v17 }
  0x89   :  { %2221 = vmatprep.mubr.msk.bf16.mxu0 %vm2631_vm0, %v2630_v2  ;;  %2218 = vmatpush3.bf16.msra.mxu0 %v2804_v54 }
  0x8a   :  { %2219 = vmatprep.subr.bf16.mxu0 %v2630_v2 }
  0x8d   :  { %2220 = vmatpush3.bf16.msra.mxu0 %v2810_v55 }
  0x8e   :  { %2233 = vmatprep.subr.bf16.mxu0 %v2630_v2 }
 0x15b   :  { %v148_v19 = vpop.f32.mrb[0].mxu0 }
 0x15c   :  { %v2183_v20 = vpop.f32.mrb[1].mxu0 }
 0x15d   :  { %v151_v21 = vpop.f32.mrb[2].mxu0 }
 0x15e   :  { %v155_v23 = vpack.c.bf16 %v151_v21, %v148_v19  ;;  %v2184_v24 = vpop.f32.mrb[3].mxu0 }
 0x160   :  { %2190 = vmatmul.mubr.msk.bf16.vlgmr.msra.gmra.mrb[0].mxu1 %vm195_vm4, %v155_v23 }
 0x161   :  { %2194 = vmatpush3.bf16.msra.mxu1 %v2754_v22  ;;  %2197 = vmatprep.mubr.msk.bf16.mxu1 %vm2631_vm0, %v2630_v2 }
 0x162   :  { %2195 = vmatprep.subr.bf16.mxu1 %v2630_v2 }
 0x165   :  { %2196 = vmatpush3.bf16.msra.mxu1 %v2761_v25 }
 0x166   :  { %2201 = vmatprep.subr.bf16.mxu1 %v2630_v2 }
 0x168   :  { %2198 = vmatmul.mubr.msk.bf16.vlgmr.msra.gmra.mrb[4].mxu1 %vm195_vm4, %v254_v27 }
 0x169   :  { %2202 = vmatpush3.bf16.msra.mxu1 %v2754_v22  ;;  %2205 = vmatprep.mubr.msk.bf16.mxu1 %vm2631_vm0, %v2630_v2 }
 0x16a   :  { %2203 = vmatprep.subr.bf16.mxu1 %v2630_v2 }
 0x16d   :  { %2204 = vmatpush3.bf16.msra.mxu1 %v2761_v25 }
 0x16e   :  { %2209 = vmatprep.subr.bf16.mxu1 %v2630_v2 }
 0x233   :  { %v233_v28 = vpop.f32.mrb[0].mxu1 }
 0x234   :  { %v2191_v29 = vpop.f32.mrb[1].mxu1  ;;  %v2783_v34 = vadd.f32 %v2020_v30, %v233_v28 }
 0x235   :  { %v236_v31 = vpop.f32.mrb[2].mxu1 }
 0x236   :  { %v2781_v32 = vadd.f32 %v2020_v30, %v236_v31  ;;  %v2192_v33 = vpop.f32.mrb[3].mxu1 }
 0x23b   :  { %v304_v35 = vpop.f32.mrb[4].mxu1 }
 0x23c   :  { %v310_v36 = vadd.f32 %v304_v35, %v2783_v34  ;;  %v2199_v37 = vpop.f32.mrb[5].mxu1  ;;  %v2027_v35 = vld [vmem:[%s3244_s3 + $0x2] sm:$0x3] }
 0x23d   :  { %v307_v38 = vpop.f32.mrb[6].mxu1 }
 0x23e   :  { %v2031_v39 = vmul.f32 -1.442695, %v310_v36  ;;  %v2200_v40 = vpop.f32.mrb[7].mxu1 }
 0x240   :  { %2425 = vpow2.f32 %v2031_v39 }
 0x241   :  { %2427 = vtanh.f32 %v310_v36 }
 0x24a   :  { %v2426_v41 = vpop.eup %2425 }
 0x24b   :  { %v315_v42 = vadd.f32 1.0, %v2426_v41  ;;  %v2428_v44 = vpop.eup %2427 }
 0x24d   :  { %2429 = vrcp.f32 %v315_v42 }
 0x257   :  { %v2430_v45 = vpop.eup %2429 }
 0x258   :  { %v318_v46 = vsel %vm2786_vm7, %v2428_v44, %v2430_v45 }
 0x259   :  { %325 = vrot.lane.b32.xlu1 %v318_v46, %s2633_s0 }
 0x25d   :  { %320 = vrot.lane.b32.xlu1 %v251_v47, %s2634_s25 }
 0x2cb   :  { %v326_v48 = vpop.permute.xlu1 %325 }
 0x2cc   :  { %v328_v49 = vmul.f32 %v326_v48, %v318_v46 }
 0x2ce   :  { %330 = vrot.lane.b32.xlu0 %v328_v49, %s2634_s25 }
 0x2cf   :  { %v321_v50 = vpop.permute.xlu1 %320 }
 0x2d0   :  { %v323_v51 = vmul.f32 %v321_v50, %v318_v46 }
 0x340   :  { %v331_v52 = vpop.permute.xlu0 %330 }
 0x341   :  { %v2798_v53 = vadd.f32 %v331_v52, %v323_v51 }
 0x343   :  { %2431 = vtanh.f32 %v2798_v53  ;;  %v400_v40 = vrot.slane %v2798_v53, 6 }
 0x34d   :  { %v2432_v56 = vpop.eup %2431 }
 0x34e   :  { %336 = vrot.lane.b32.xlu1 %v2432_v56, %s2633_s0 }
 0x3c0   :  { %v337_v57 = vpop.permute.xlu1 %336 }
 0x3c1   :  { %v339_v58 = vmul.f32 %v337_v57, %v318_v46 }
 0x3c3   :  { %v340_v59 = vpack.c.bf16 %v339_v58, %v339_v58 }
 0x3c5   :  { %342 = vrot.lane.b32.xlu0 %v340_v59, %s2634_s25 }
 0x437   :  { %v343_v61 = vpop.permute.xlu0 %342 }
 0x438   :  { %2206 = vmatmul.mubr.msk.bf16.vlgmr.msra.gmra.mrb[8].mxu1 %vm195_vm4, %v343_v61  ;;  %2222 = vmatmul.mubr.msk.bf16.vlgmr.msra.gmra.mrb[4].mxu0 %vm195_vm4, %v343_v61 }
 0x439   :  { %2210 = vmatpush3.bf16.msra.mxu1 %v2820_v60  ;;  %2213 = vmatprep.mubr.msk.bf16.mxu1 %vm2631_vm0, %v2630_v2 }
 0x43a   :  { %2211 = vmatprep.subr.bf16.mxu1 %v2630_v2  ;;  %2234 = vmatpush3.bf16.msra.mxu0 %v2820_v60 }
 0x43b   :  { %2235 = vmatprep.subr.bf16.mxu0 %v2630_v2  ;;  %2237 = vmatprep.mubr.msk.bf16.mxu0 %vm2631_vm0, %v2630_v2 }
 0x43d   :  { %2212 = vmatpush3.bf16.msra.mxu1 %v2828_v62 }
 0x43e   :  { %2225 = vmatprep.subr.bf16.mxu1 %v2630_v2  ;;  %2236 = vmatpush3.bf16.msra.mxu0 %v2828_v62 }
 0x43f   :  { %2249 = vmatprep.subr.bf16.mxu0 %v2630_v2 }
 0x440   :  { %2214 = vmatmul.mubr.msk.bf16.vlgmr.msra.gmra.mrb[12].mxu1 %vm195_vm4, %v419_v0 }
 0x441   :  { %2226 = vmatpush3.bf16.msra.mxu1 %v2754_v22  ;;  %2229 = vmatprep.mubr.msk.bf16.mxu1 %vm2631_vm0, %v2630_v2 }
 0x442   :  { %2227 = vmatprep.subr.bf16.mxu1 %v2630_v2 }
 0x445   :  { %2228 = vmatpush3.bf16.msra.mxu1 %v2761_v25 }
 0x446   :  { %2241 = vmatprep.subr.bf16.mxu1 %v2630_v2 }
 0x50b   :  { %v381_v1 = vpop.f32.mrb[8].mxu1  ;;  %v521_v3 = vpop.f32.mrb[4].mxu0 }
 0x50c   :  { %v388_v4 = vrot.slane %v381_v1, 6  ;;  %v2207_v5 = vpop.f32.mrb[9].mxu1  ;;  %v2223_v6 = vpop.f32.mrb[5].mxu0 }
 0x50d   :  { %v384_v7 = vpop.f32.mrb[10].mxu1  ;;  %v524_v8 = vpop.f32.mrb[6].mxu0 }
 0x50e   :  { %v390_v9 = vadd.f32 %v388_v4, %v2783_v34  ;;  %v2208_v10 = vpop.f32.mrb[11].mxu1  ;;  %v2224_v11 = vpop.f32.mrb[7].mxu0 }
 0x510   :  { %v2033_v12 = vmul.f32 -1.442695, %v390_v9 }
 0x512   :  { %2433 = vpow2.f32 %v2033_v12 }
 0x513   :  { %v469_v14 = vpop.f32.mrb[12].mxu1 }
 0x514   :  { %v522_v15 = vadd.f32 %v521_v3, %v469_v14  ;;  %v2215_v16 = vpop.f32.mrb[13].mxu1 }
 0x515   :  { %v472_v17 = vpop.f32.mrb[14].mxu1 }
 0x516   :  { %v527_v18 = vadd.f32 %v2855_v13, %v522_v15  ;;  %v2216_v19 = vpop.f32.mrb[15].mxu1 }
 0x518   :  { %v2040_v20 = vmul.f32 -1.442695, %v527_v18 }
 0x51a   :  { %2435 = vpow2.f32 %v2040_v20 }
 0x51b   :  { %2437 = vtanh.f32 %v390_v9 }
 0x51c   :  { %v2434_v21 = vpop.eup %2433 }
 0x51d   :  { %v395_v23 = vadd.f32 1.0, %v2434_v21 }
 0x51f   :  { %2439 = vrcp.f32 %v395_v23 }
 0x520   :  { %2441 = vtanh.f32 %v527_v18 }
 0x524   :  { %v2436_v24 = vpop.eup %2435 }
 0x525   :  { %v532_v26 = vadd.f32 1.0, %v2436_v24  ;;  %v2438_v27 = vpop.eup %2437 }
 0x527   :  { %2443 = vrcp.f32 %v532_v26 }
 0x529   :  { %v2440_v28 = vpop.eup %2439 }
 0x52a   :  { %v398_v29 = vsel %vm2786_vm7, %v2438_v27, %v2440_v28  ;;  %v2442_v30 = vpop.eup %2441 }
 0x52b   :  { %404 = vrot.lane.b32.xlu1 %v398_v29, %s2633_s0  ;;  %v402_v41 = vmul.f32 %v400_v40, %v398_v29 }
 0x531   :  { %v2444_v31 = vpop.eup %2443 }
 0x532   :  { %v535_v33 = vsel %vm2786_vm7, %v2442_v30, %v2444_v31 }
 0x533   :  { %542 = vrot.lane.b32.xlu0 %v535_v33, %s2633_s0 }
 0x537   :  { %537 = vrot.lane.b32.xlu0 %v2027_v35, %s2634_s25 }
 0x59d   :  { %v405_v36 = vpop.permute.xlu1 %404 }
 0x59e   :  { %v407_v37 = vmul.f32 %v405_v36, %v398_v29 }
 0x5a0   :  { %409 = vrot.lane.b32.xlu1 %v407_v37, %s2634_s25 }
 0x5a5   :  { %v543_v38 = vpop.permute.xlu0 %542 }
 0x5a6   :  { %v545_v39 = vmul.f32 %v543_v38, %v535_v33 }
 0x5a8   :  { %547 = vrot.lane.b32.xlu1 %v545_v39, %s2634_s25 }
 0x5a9   :  { %v538_v45 = vpop.permute.xlu0 %537 }
 0x5aa   :  { %v540_v46 = vmul.f32 %v538_v45, %v535_v33 }
 0x612   :  { %v410_v42 = vpop.permute.xlu1 %409 }
 0x613   :  { %v2871_v44 = vadd.f32 %v410_v42, %v402_v41 }
 0x615   :  { %2445 = vtanh.f32 %v2871_v44  ;;  %v618_v38 = vrot.slane %v2871_v44, 6 }
 0x61a   :  { %v548_v47 = vpop.permute.xlu1 %547 }
 0x61b   :  { %v2874_v48 = vadd.f32 %v548_v47, %v540_v46 }
 0x61d   :  { %2447 = vtanh.f32 %v2874_v48 }
 0x61f   :  { %v2446_v49 = vpop.eup %2445 }
 0x620   :  { %415 = vrot.lane.b32.xlu0 %v2446_v49, %s2633_s0 }
 0x627   :  { %v2448_v50 = vpop.eup %2447 }
 0x628   :  { %553 = vrot.lane.b32.xlu1 %v2448_v50, %s2633_s0 }
 0x692   :  { %v416_v51 = vpop.permute.xlu0 %415 }
 0x693   :  { %v418_v52 = vmul.f32 %v416_v51, %v398_v29 }
 0x695   :  { %v557_v53 = vpack.c.bf16 %v418_v52, %v418_v52 }
 0x697   :  { %v559_v56 = vrot.slane %v557_v53, 1 }
 0x699   :  { %560 = vrot.lane.b32.xlu0 %v559_v56, %s2634_s25 }
 0x69a   :  { %v554_v57 = vpop.permute.xlu1 %553 }
 0x69b   :  { %v2880_v58 = vmul.f32 %v554_v57, %v535_v33 }
 0x69d   :  { %v637_v59 = vpack.c.bf16 %v2880_v58, %v2880_v58 }
 0x69f   :  { %639 = vrot.lane.b32.xlu1 %v637_v59, %s2634_s25 }
 0x70b   :  { %v561_v61 = vpop.permute.xlu0 %560 }
 0x70c   :  { %2230 = vmatmul.mubr.msk.bf16.vlgmr.msra.gmra.mrb[16].mxu1 %vm195_vm4, %v561_v61 }
 0x70d   :  { %2242 = vmatpush3.bf16.msra.mxu1 %v2804_v54  ;;  %2245 = vmatprep.mubr.msk.bf16.mxu1 %vm2631_vm0, %v2630_v2 }
 0x70e   :  { %2243 = vmatprep.subr.bf16.mxu1 %v2630_v2 }
 0x711   :  { %v640_v63 = vpop.permute.xlu1 %639  ;;  %2244 = vmatpush3.bf16.msra.mxu1 %v2810_v55 }
 0x712   :  { %2238 = vmatmul.mubr.msk.bf16.vlgmr.msra.gmra.mrb[8].mxu0 %vm195_vm4, %v640_v63  ;;  %2257 = vmatprep.subr.bf16.mxu1 %v2630_v2 }
 0x713   :  { %2250 = vmatpush3.bf16.msra.mxu0 %v2754_v22  ;;  %2253 = vmatprep.mubr.msk.bf16.mxu0 %vm2631_vm0, %v2630_v2 }
 0x714   :  { %2246 = vmatmul.mubr.msk.bf16.vlgmr.msra.gmra.mrb[20].mxu1 %vm195_vm4, %v561_v61  ;;  %2251 = vmatprep.subr.bf16.mxu0 %v2630_v2 }
 0x715   :  { %2258 = vmatpush3.bf16.msra.mxu1 %v2820_v60  ;;  %2261 = vmatprep.mubr.msk.bf16.mxu1 %vm2631_vm0, %v2630_v2 }
 0x716   :  { %2259 = vmatprep.subr.bf16.mxu1 %v2630_v2 }
 0x717   :  { %2252 = vmatpush3.bf16.msra.mxu0 %v2761_v25 }
 0x718   :  { %2265 = vmatprep.subr.bf16.mxu0 %v2630_v2 }
 0x719   :  { %2260 = vmatpush3.bf16.msra.mxu1 %v2828_v62 }
 0x71a   :  { %2273 = vmatprep.subr.bf16.mxu1 %v2630_v2 }
 0x7df   :  { %v599_v0 = vpop.f32.mrb[16].mxu1 }
 0x7e0   :  { %v606_v1 = vrot.slane %v599_v0, 4  ;;  %v2231_v3 = vpop.f32.mrb[17].mxu1 }
 0x7e1   :  { %v602_v4 = vpop.f32.mrb[18].mxu1 }
 0x7e2   :  { %v608_v5 = vadd.f32 %v606_v1, %v2783_v34  ;;  %v2232_v6 = vpop.f32.mrb[19].mxu1 }
 0x7e4   :  { %v2042_v7 = vmul.f32 -1.442695, %v608_v5 }
 0x7e5   :  { %v678_v8 = vpop.f32.mrb[8].mxu0 }
 0x7e6   :  { %2449 = vpow2.f32 %v2042_v7  ;;  %v2239_v9 = vpop.f32.mrb[9].mxu0 }
 0x7e7   :  { %v681_v10 = vpop.f32.mrb[10].mxu0  ;;  %v718_v11 = vpop.f32.mrb[20].mxu1 }
 0x7e8   :  { %v719_v12 = vadd.f32 %v718_v11, %v678_v8  ;;  %v2240_v14 = vpop.f32.mrb[11].mxu0  ;;  %v2247_v15 = vpop.f32.mrb[21].mxu1 }
 0x7e9   :  { %v721_v16 = vpop.f32.mrb[22].mxu1 }
 0x7ea   :  { %v724_v17 = vadd.f32 %v2855_v13, %v719_v12  ;;  %v2248_v18 = vpop.f32.mrb[23].mxu1 }
 0x7ec   :  { %v2045_v19 = vmul.f32 -1.442695, %v724_v17 }
 0x7ee   :  { %2451 = vpow2.f32 %v2045_v19 }
 0x7ef   :  { %2453 = vtanh.f32 %v608_v5 }
 0x7f0   :  { %v2450_v20 = vpop.eup %2449 }
 0x7f1   :  { %v613_v21 = vadd.f32 1.0, %v2450_v20 }
 0x7f3   :  { %2455 = vrcp.f32 %v613_v21 }
 0x7f4   :  { %2457 = vtanh.f32 %v724_v17 }
 0x7f8   :  { %v2452_v23 = vpop.eup %2451 }
 0x7f9   :  { %v729_v24 = vadd.f32 1.0, %v2452_v23  ;;  %v2454_v26 = vpop.eup %2453 }
 0x7fb   :  { %2459 = vrcp.f32 %v729_v24 }
 0x7fd   :  { %v2456_v27 = vpop.eup %2455 }
 0x7fe   :  { %v616_v28 = vsel %vm2786_vm7, %v2454_v26, %v2456_v27  ;;  %v2458_v29 = vpop.eup %2457 }
 0x7ff   :  { %622 = vrot.lane.b32.xlu0 %v616_v28, %s2633_s0  ;;  %v620_v39 = vmul.f32 %v618_v38, %v616_v28 }
 0x805   :  { %v2460_v30 = vpop.eup %2459 }
 0x806   :  { %v732_v31 = vsel %vm2786_vm7, %v2458_v29, %v2460_v30 }
 0x807   :  { %735 = vrot.lane.b32.xlu1 %v732_v31, %s2633_s0  ;;  %v733_v42 = vmul.f32 %v732_v31, %v2874_v48 }
 0x871   :  { %v623_v33 = vpop.permute.xlu0 %622 }
 0x872   :  { %v625_v35 = vmul.f32 %v623_v33, %v616_v28 }
 0x874   :  { %627 = vrot.lane.b32.xlu0 %v625_v35, %s2634_s25 }
 0x879   :  { %v736_v36 = vpop.permute.xlu1 %735 }
 0x87a   :  { %v738_v37 = vmul.f32 %v736_v36, %v732_v31 }
 0x87c   :  { %740 = vrot.lane.b32.xlu1 %v738_v37, %s2634_s25 }
 0x8e6   :  { %v628_v40 = vpop.permute.xlu0 %627 }
 0x8e7   :  { %v2917_v41 = vadd.f32 %v628_v40, %v620_v39 }
 0x8e9   :  { %2461 = vtanh.f32 %v2917_v41  ;;  %v811_v35 = vrot.slane %v2917_v41, 6 }
 0x8ee   :  { %v741_v45 = vpop.permute.xlu1 %740 }
 0x8ef   :  { %v2921_v46 = vadd.f32 %v741_v45, %v733_v42 }
 0x8f1   :  { %2463 = vtanh.f32 %v2921_v46 }
 0x8f3   :  { %v2462_v47 = vpop.eup %2461 }
 0x8f4   :  { %633 = vrot.lane.b32.xlu0 %v2462_v47, %s2633_s0 }
 0x8fb   :  { %v2464_v49 = vpop.eup %2463 }
 0x8fc   :  { %746 = vrot.lane.b32.xlu1 %v2464_v49, %s2633_s0 }
 0x966   :  { %v634_v44 = vpop.permute.xlu0 %633 }
 0x967   :  { %v636_v50 = vmul.f32 %v634_v44, %v616_v28 }
 0x969   :  { %v750_v51 = vpack.c.bf16 %v636_v50, %v636_v50 }
 0x96b   :  { %v752_v52 = vrot.slane %v750_v51, 2 }
 0x96d   :  { %753 = vrot.lane.b32.xlu0 %v752_v52, %s2634_s25 }
 0x96e   :  { %v747_v53 = vpop.permute.xlu1 %746 }
 0x96f   :  { %v2927_v56 = vmul.f32 %v747_v53, %v732_v31 }
 0x971   :  { %v830_v48 = vpack.c.bf16 %v2927_v56, %v2927_v56  ;;  %v1857_v51 = vrot.slane %v2927_v56, 6 }
 0x973   :  { %832 = vrot.lane.b32.xlu1 %v830_v48, %s2634_s25 }
 0x9df   :  { %v754_v57 = vpop.permute.xlu0 %753 }
 0x9e0   :  { %2254 = vmatmul.mubr.msk.bf16.vlgmr.msra.gmra.mrb[12].mxu0 %vm195_vm4, %v754_v57 }
 0x9e1   :  { %2266 = vmatpush3.bf16.msra.mxu0 %v2804_v54  ;;  %2269 = vmatprep.mubr.msk.bf16.mxu0 %vm2631_vm0, %v2630_v2 }
 0x9e2   :  { %2267 = vmatprep.subr.bf16.mxu0 %v2630_v2 }
 0x9e5   :  { %2268 = vmatpush3.bf16.msra.mxu0 %v2810_v55  ;;  %v833_v59 = vpop.permute.xlu1 %832 }
 0x9e6   :  { %2262 = vmatmul.mubr.msk.bf16.vlgmr.msra.gmra.mrb[24].mxu1 %vm195_vm4, %v833_v59  ;;  %2281 = vmatprep.subr.bf16.mxu0 %v2630_v2 }
 0x9e7   :  { %2274 = vmatpush3.bf16.msra.mxu1 %v2754_v22  ;;  %2277 = vmatprep.mubr.msk.bf16.mxu1 %vm2631_vm0, %v2630_v2 }
 0x9e8   :  { %2270 = vmatmul.mubr.msk.bf16.vlgmr.msra.gmra.mrb[16].mxu0 %vm195_vm4, %v754_v57  ;;  %2275 = vmatprep.subr.bf16.mxu1 %v2630_v2  ;;  %v1874_v57 = vsel %vm1873_vm8, %v2880_v58, %v1857_v51 }
 0x9e9   :  { %2282 = vmatpush3.bf16.msra.mxu0 %v2820_v60  ;;  %2285 = vmatprep.mubr.msk.bf16.mxu0 %vm2631_vm0, %v2630_v2 }
 0x9ea   :  { %2283 = vmatprep.subr.bf16.mxu0 %v2630_v2 }
 0x9eb   :  { %2276 = vmatpush3.bf16.msra.mxu1 %v2761_v25 }
 0x9ec   :  { %2289 = vmatprep.subr.bf16.mxu1 %v2630_v2 }
 0x9ed   :  { %2284 = vmatpush3.bf16.msra.mxu0 %v2828_v62 }
 0x9ee   :  { %2297 = vmatprep.subr.bf16.mxu0 %v2630_v2 }
 0xab3   :  { %v792_v61 = vpop.f32.mrb[12].mxu0 }
 0xab4   :  { %v799_v63 = vrot.slane %v792_v61, 2  ;;  %v2255_v0 = vpop.f32.mrb[13].mxu0 }
 0xab5   :  { %v795_v1 = vpop.f32.mrb[14].mxu0 }
 0xab6   :  { %v801_v3 = vadd.f32 %v799_v63, %v2783_v34  ;;  %v2256_v4 = vpop.f32.mrb[15].mxu0 }
 0xab8   :  { %v2047_v5 = vmul.f32 -1.442695, %v801_v3 }
 0xab9   :  { %v871_v6 = vpop.f32.mrb[24].mxu1 }
 0xaba   :  { %2465 = vpow2.f32 %v2047_v5  ;;  %v2263_v7 = vpop.f32.mrb[25].mxu1 }
 0xabb   :  { %v874_v8 = vpop.f32.mrb[26].mxu1  ;;  %v911_v9 = vpop.f32.mrb[16].mxu0 }
 0xabc   :  { %v912_v10 = vadd.f32 %v911_v9, %v871_v6  ;;  %v2264_v11 = vpop.f32.mrb[27].mxu1  ;;  %v2271_v12 = vpop.f32.mrb[17].mxu0 }
 0xabd   :  { %v914_v14 = vpop.f32.mrb[18].mxu0 }
 0xabe   :  { %v917_v15 = vadd.f32 %v2855_v13, %v912_v10  ;;  %v2272_v16 = vpop.f32.mrb[19].mxu0 }
 0xac0   :  { %v2050_v17 = vmul.f32 -1.442695, %v917_v15 }
 0xac2   :  { %2467 = vpow2.f32 %v2050_v17 }
 0xac3   :  { %2469 = vtanh.f32 %v801_v3 }
 0xac4   :  { %v2466_v18 = vpop.eup %2465 }
 0xac5   :  { %v806_v19 = vadd.f32 1.0, %v2466_v18 }
 0xac7   :  { %2471 = vrcp.f32 %v806_v19 }
 0xac8   :  { %2473 = vtanh.f32 %v917_v15 }
 0xacc   :  { %v2468_v34 = vpop.eup %2467 }
 0xacd   :  { %v922_v20 = vadd.f32 1.0, %v2468_v34  ;;  %v2470_v21 = vpop.eup %2469 }
 0xacf   :  { %2475 = vrcp.f32 %v922_v20 }
 0xad1   :  { %v2472_v23 = vpop.eup %2471 }
 0xad2   :  { %v809_v24 = vsel %vm2786_vm7, %v2470_v21, %v2472_v23  ;;  %v2474_v26 = vpop.eup %2473 }
 0xad3   :  { %815 = vrot.lane.b32.xlu0 %v809_v24, %s2633_s0  ;;  %v813_v36 = vmul.f32 %v811_v35, %v809_v24 }
 0xad9   :  { %v2476_v27 = vpop.eup %2475 }
 0xada   :  { %v925_v28 = vsel %vm2786_vm7, %v2474_v26, %v2476_v27 }
 0xadb   :  { %928 = vrot.lane.b32.xlu1 %v925_v28, %s2633_s0  ;;  %v926_v39 = vmul.f32 %v925_v28, %v2921_v46 }
 0xb45   :  { %v816_v29 = vpop.permute.xlu0 %815 }
 0xb46   :  { %v818_v30 = vmul.f32 %v816_v29, %v809_v24 }
 0xb48   :  { %820 = vrot.lane.b32.xlu0 %v818_v30, %s2634_s25 }
 0xb4d   :  { %v929_v31 = vpop.permute.xlu1 %928 }
 0xb4e   :  { %v931_v33 = vmul.f32 %v929_v31, %v925_v28 }
 0xb50   :  { %933 = vrot.lane.b32.xlu1 %v931_v33, %s2634_s25 }
 0xbba   :  { %v821_v37 = vpop.permute.xlu0 %820 }
 0xbbb   :  { %v2964_v38 = vadd.f32 %v821_v37, %v813_v36 }
 0xbbd   :  { %2477 = vtanh.f32 %v2964_v38  ;;  %v1001_v33 = vrot.slane %v2964_v38, 6 }
 0xbc2   :  { %v934_v40 = vpop.permute.xlu1 %933 }
 0xbc3   :  { %v2968_v42 = vadd.f32 %v934_v40, %v926_v39 }
 0xbc5   :  { %2479 = vtanh.f32 %v2968_v42 }
 0xbc7   :  { %v2478_v45 = vpop.eup %2477 }
 0xbc8   :  { %826 = vrot.lane.b32.xlu0 %v2478_v45, %s2633_s0 }
 0xbcf   :  { %v2480_v47 = vpop.eup %2479 }
 0xbd0   :  { %939 = vrot.lane.b32.xlu1 %v2480_v47, %s2633_s0 }
 0xc3a   :  { %v827_v41 = vpop.permute.xlu0 %826 }
 0xc3b   :  { %v829_v49 = vmul.f32 %v827_v41, %v809_v24 }
 0xc3d   :  { %v943_v44 = vpack.c.bf16 %v829_v49, %v829_v49 }
 0xc3f   :  { %v945_v50 = vrot.slane %v943_v44, 3 }
 0xc41   :  { %946 = vrot.lane.b32.xlu0 %v945_v50, %s2634_s25 }
 0xc42   :  { %v940_v46 = vpop.permute.xlu1 %939 }
 0xc43   :  { %v942_v52 = vmul.f32 %v940_v46, %v925_v28 }
 0xc45   :  { %v1020_v53 = vpack.c.bf16 %v942_v52, %v942_v52  ;;  %v1860_v48 = vrot.slane %v942_v52, 4 }
 0xc47   :  { %v2978_v59 = vsel %vm1875_vm9, %v1874_v57, %v1860_v48  ;;  %1022 = vrot.lane.b32.xlu1 %v1020_v53, %s2634_s25 }
 0xcb3   :  { %v947_v61 = vpop.permute.xlu0 %946 }
 0xcb4   :  { %2278 = vmatmul.mubr.msk.bf16.vlgmr.msra.gmra.mrb[28].mxu1 %vm195_vm4, %v947_v61 }
 0xcb5   :  { %2290 = vmatpush3.bf16.msra.mxu1 %v2804_v54  ;;  %2293 = vmatprep.mubr.msk.bf16.mxu1 %vm2631_vm0, %v2630_v2 }
 0xcb6   :  { %2291 = vmatprep.subr.bf16.mxu1 %v2630_v2 }
 0xcb9   :  { %2292 = vmatpush3.bf16.msra.mxu1 %v2810_v55  ;;  %v1023_v56 = vpop.permute.xlu1 %1022 }
 0xcba   :  { %2286 = vmatmul.mubr.msk.bf16.vlgmr.msra.gmra.mrb[20].mxu0 %vm195_vm4, %v1023_v56  ;;  %2305 = vmatprep.subr.bf16.mxu1 %v2630_v2 }
 0xcbb   :  { %2298 = vmatpush3.bf16.msra.mxu0 %v2754_v22  ;;  %2301 = vmatprep.mubr.msk.bf16.mxu0 %vm2631_vm0, %v2630_v2 }
 0xcbc   :  { %2294 = vmatmul.mubr.msk.bf16.vlgmr.msra.gmra.mrb[32].mxu1 %vm195_vm4, %v947_v61  ;;  %2299 = vmatprep.subr.bf16.mxu0 %v2630_v2 }
 0xcbd   :  { %2306 = vmatpush3.bf16.msra.mxu1 %v2820_v60  ;;  %2309 = vmatprep.mubr.msk.bf16.mxu1 %vm2631_vm0, %v2630_v2 }
 0xcbe   :  { %2307 = vmatprep.subr.bf16.mxu1 %v2630_v2 }
 0xcbf   :  { %2300 = vmatpush3.bf16.msra.mxu0 %v2761_v25 }
 0xcc0   :  { %2313 = vmatprep.subr.bf16.mxu0 %v2630_v2 }
 0xcc1   :  { %2308 = vmatpush3.bf16.msra.mxu1 %v2828_v62 }
 0xcc2   :  { %2321 = vmatprep.subr.bf16.mxu1 %v2630_v2 }
 0xd87   :  { %v985_v58 = vpop.f32.mrb[28].mxu1 }
 0xd88   :  { %v991_v63 = vadd.f32 %v985_v58, %v2781_v32  ;;  %v2279_v0 = vpop.f32.mrb[29].mxu1 }
 0xd89   :  { %v988_v1 = vpop.f32.mrb[30].mxu1 }
 0xd8a   :  { %v2052_v3 = vmul.f32 -1.442695, %v991_v63  ;;  %v2280_v4 = vpop.f32.mrb[31].mxu1 }
 0xd8c   :  { %2481 = vpow2.f32 %v2052_v3 }
 0xd8d   :  { %v1061_v5 = vpop.f32.mrb[20].mxu0 }
 0xd8e   :  { %v2287_v6 = vpop.f32.mrb[21].mxu0 }
 0xd8f   :  { %v1064_v7 = vpop.f32.mrb[22].mxu0  ;;  %v1101_v8 = vpop.f32.mrb[32].mxu1 }
 0xd90   :  { %v1102_v9 = vadd.f32 %v1101_v8, %v1061_v5  ;;  %v2288_v10 = vpop.f32.mrb[23].mxu0  ;;  %v2295_v11 = vpop.f32.mrb[33].mxu1 }
 0xd91   :  { %v1104_v12 = vpop.f32.mrb[34].mxu1 }
 0xd92   :  { %v1107_v14 = vadd.f32 %v2855_v13, %v1102_v9  ;;  %v2296_v15 = vpop.f32.mrb[35].mxu1 }
 0xd94   :  { %v2055_v16 = vmul.f32 -1.442695, %v1107_v14 }
 0xd96   :  { %v2482_v17 = vpop.eup %2481  ;;  %2483 = vpow2.f32 %v2055_v16 }
 0xd97   :  { %v996_v18 = vadd.f32 1.0, %v2482_v17  ;;  %2485 = vtanh.f32 %v991_v63 }
 0xd99   :  { %2487 = vrcp.f32 %v996_v18 }
 0xd9a   :  { %2489 = vtanh.f32 %v1107_v14 }
 0xda0   :  { %v2484_v19 = vpop.eup %2483 }
 0xda1   :  { %v1112_v34 = vadd.f32 1.0, %v2484_v19  ;;  %v2486_v20 = vpop.eup %2485 }
 0xda3   :  { %v2488_v21 = vpop.eup %2487  ;;  %2491 = vrcp.f32 %v1112_v34 }
 0xda4   :  { %v999_v23 = vsel %vm2786_vm7, %v2486_v20, %v2488_v21  ;;  %v2490_v24 = vpop.eup %2489 }
 0xda5   :  { %1005 = vrot.lane.b32.xlu0 %v999_v23, %s2633_s0  ;;  %v1003_v35 = vmul.f32 %v1001_v33, %v999_v23 }
 0xdad   :  { %v2492_v26 = vpop.eup %2491 }
 0xdae   :  { %v1115_v27 = vsel %vm2786_vm7, %v2490_v24, %v2492_v26 }
 0xdaf   :  { %1118 = vrot.lane.b32.xlu1 %v1115_v27, %s2633_s0  ;;  %v1116_v39 = vmul.f32 %v1115_v27, %v2968_v42 }
 0xe17   :  { %v1006_v28 = vpop.permute.xlu0 %1005 }
 0xe18   :  { %v1008_v29 = vmul.f32 %v1006_v28, %v999_v23 }
 0xe1a   :  { %1010 = vrot.lane.b32.xlu0 %v1008_v29, %s2634_s25 }
 0xe21   :  { %v1119_v30 = vpop.permute.xlu1 %1118 }
 0xe22   :  { %v1121_v31 = vmul.f32 %v1119_v30, %v1115_v27 }
 0xe24   :  { %1123 = vrot.lane.b32.xlu1 %v1121_v31, %s2634_s25 }
 0xe8c   :  { %v1011_v36 = vpop.permute.xlu0 %1010 }
 0xe8d   :  { %v3013_v37 = vadd.f32 %v1011_v36, %v1003_v35 }
 0xe8f   :  { %2493 = vtanh.f32 %v3013_v37  ;;  %v1193_v28 = vrot.slane %v3013_v37, 6 }
 0xe96   :  { %v1124_v40 = vpop.permute.xlu1 %1123 }
 0xe97   :  { %v3017_v45 = vadd.f32 %v1124_v40, %v1116_v39 }
 0xe99   :  { %v2494_v47 = vpop.eup %2493  ;;  %2495 = vtanh.f32 %v3017_v45 }
 0xe9a   :  { %1016 = vrot.lane.b32.xlu0 %v2494_v47, %s2633_s0 }
 0xea3   :  { %v2496_v41 = vpop.eup %2495 }
 0xea4   :  { %1129 = vrot.lane.b32.xlu1 %v2496_v41, %s2633_s0 }
 0xf0c   :  { %v1017_v38 = vpop.permute.xlu0 %1016 }
 0xf0d   :  { %v1019_v49 = vmul.f32 %v1017_v38, %v999_v23 }
 0xf0f   :  { %v1133_v44 = vpack.c.bf16 %v1019_v49, %v1019_v49 }
 0xf11   :  { %1135 = vrot.lane.b32.xlu0 %v1133_v44, %s2634_s25 }
 0xf16   :  { %v1130_v50 = vpop.permute.xlu1 %1129 }
 0xf17   :  { %v1132_v51 = vmul.f32 %v1130_v50, %v1115_v27 }
 0xf19   :  { %v1212_v42 = vpack.c.bf16 %v1132_v51, %v1132_v51  ;;  %v1863_v46 = vrot.slane %v1132_v51, 2 }
 0xf1b   :  { %1214 = vrot.lane.b32.xlu1 %v1212_v42, %s2634_s25  ;;  %v3026_v52 = vsel %vm1877_vm10, %v2978_v59, %v1863_v46 }
 0xf83   :  { %v1136_v53 = vpop.permute.xlu0 %1135 }
 0xf84   :  { %2302 = vmatmul.mubr.msk.bf16.vlgmr.msra.gmra.mrb[24].mxu0 %vm195_vm4, %v1136_v53 }
 0xf85   :  { %2314 = vmatpush3.bf16.msra.mxu0 %v2804_v54  ;;  %2317 = vmatprep.mubr.msk.bf16.mxu0 %vm2631_vm0, %v2630_v2 }
 0xf86   :  { %2315 = vmatprep.subr.bf16.mxu0 %v2630_v2 }
 0xf89   :  { %2316 = vmatpush3.bf16.msra.mxu0 %v2810_v55 }
 0xf8a   :  { %2329 = vmatprep.subr.bf16.mxu0 %v2630_v2 }
 0xf8c   :  { %2318 = vmatmul.mubr.msk.bf16.vlgmr.msra.gmra.mrb[28].mxu0 %vm195_vm4, %v1136_v53 }
 0xf8d   :  { %v1215_v48 = vpop.permute.xlu1 %1214  ;;  %2330 = vmatpush3.bf16.msra.mxu0 %v2820_v60  ;;  %2333 = vmatprep.mubr.msk.bf16.mxu0 %vm2631_vm0, %v2630_v2 }
 0xf8e   :  { %2310 = vmatmul.mubr.msk.bf16.vlgmr.msra.gmra.mrb[36].mxu1 %vm195_vm4, %v1215_v48  ;;  %2331 = vmatprep.subr.bf16.mxu0 %v2630_v2 }
 0xf8f   :  { %2322 = vmatpush3.bf16.msra.mxu1 %v2754_v22  ;;  %2325 = vmatprep.mubr.msk.bf16.mxu1 %vm2631_vm0, %v2630_v2 }
 0xf90   :  { %2323 = vmatprep.subr.bf16.mxu1 %v2630_v2 }
 0xf91   :  { %2332 = vmatpush3.bf16.msra.mxu0 %v2828_v62 }
 0xf92   :  { %2345 = vmatprep.subr.bf16.mxu0 %v2630_v2 }
 0xf93   :  { %2324 = vmatpush3.bf16.msra.mxu1 %v2761_v25 }
 0xf94   :  { %2337 = vmatprep.subr.bf16.mxu1 %v2630_v2 }
0x1057   :  { %v1174_v57 = vpop.f32.mrb[24].mxu0 }
0x1058   :  { %v1181_v59 = vrot.slane %v1174_v57, 6  ;;  %v2303_v61 = vpop.f32.mrb[25].mxu0 }
0x1059   :  { %v1177_v56 = vpop.f32.mrb[26].mxu0 }
0x105a   :  { %v1183_v58 = vadd.f32 %v1181_v59, %v2781_v32  ;;  %v2304_v63 = vpop.f32.mrb[27].mxu0 }
0x105c   :  { %v2057_v0 = vmul.f32 -1.442695, %v1183_v58 }
0x105e   :  { %2497 = vpow2.f32 %v2057_v0 }
0x105f   :  { %v1293_v1 = vpop.f32.mrb[28].mxu0 }
0x1060   :  { %v2319_v3 = vpop.f32.mrb[29].mxu0 }
0x1061   :  { %v1253_v4 = vpop.f32.mrb[36].mxu1  ;;  %v1296_v5 = vpop.f32.mrb[30].mxu0 }
0x1062   :  { %v1294_v6 = vadd.f32 %v1293_v1, %v1253_v4  ;;  %v2311_v7 = vpop.f32.mrb[37].mxu1  ;;  %v2320_v8 = vpop.f32.mrb[31].mxu0 }
0x1063   :  { %v1256_v9 = vpop.f32.mrb[38].mxu1 }
0x1064   :  { %v1299_v25 = vadd.f32 %v2855_v13, %v1294_v6  ;;  %v2312_v10 = vpop.f32.mrb[39].mxu1 }
0x1066   :  { %v2060_v11 = vmul.f32 -1.442695, %v1299_v25 }
0x1068   :  { %v2498_v12 = vpop.eup %2497  ;;  %2499 = vpow2.f32 %v2060_v11 }
0x1069   :  { %v1188_v14 = vadd.f32 1.0, %v2498_v12  ;;  %2501 = vtanh.f32 %v1183_v58 }
0x106b   :  { %2503 = vrcp.f32 %v1188_v14 }
0x106c   :  { %2505 = vtanh.f32 %v1299_v25 }
0x1072   :  { %v2500_v15 = vpop.eup %2499 }
0x1073   :  { %v1304_v16 = vadd.f32 1.0, %v2500_v15  ;;  %v2502_v17 = vpop.eup %2501 }
0x1075   :  { %v2504_v18 = vpop.eup %2503  ;;  %2507 = vrcp.f32 %v1304_v16 }
0x1076   :  { %v1191_v19 = vsel %vm2786_vm7, %v2502_v17, %v2504_v18  ;;  %v2506_v34 = vpop.eup %2505 }
0x1077   :  { %1197 = vrot.lane.b32.xlu0 %v1191_v19, %s2633_s0  ;;  %v1195_v29 = vmul.f32 %v1193_v28, %v1191_v19 }
0x107f   :  { %v2508_v20 = vpop.eup %2507 }
0x1080   :  { %v1307_v21 = vsel %vm2786_vm7, %v2506_v34, %v2508_v20 }
0x1081   :  { %1310 = vrot.lane.b32.xlu1 %v1307_v21, %s2633_s0  ;;  %v1308_v33 = vmul.f32 %v1307_v21, %v3017_v45 }
0x10e9   :  { %v1198_v23 = vpop.permute.xlu0 %1197 }
0x10ea   :  { %v1200_v24 = vmul.f32 %v1198_v23, %v1191_v19 }
0x10ec   :  { %1202 = vrot.lane.b32.xlu0 %v1200_v24, %s2634_s25 }
0x10f3   :  { %v1311_v26 = vpop.permute.xlu1 %1310 }
0x10f4   :  { %v1313_v27 = vmul.f32 %v1311_v26, %v1307_v21 }
0x10f6   :  { %1315 = vrot.lane.b32.xlu1 %v1313_v27, %s2634_s25 }
0x115e   :  { %v1203_v30 = vpop.permute.xlu0 %1202 }
0x115f   :  { %v3060_v31 = vadd.f32 %v1203_v30, %v1195_v29 }
0x1161   :  { %2509 = vtanh.f32 %v3060_v31  ;;  %v1386_v18 = vrot.slane %v3060_v31, 6 }
0x1168   :  { %v1316_v35 = vpop.permute.xlu1 %1315 }
0x1169   :  { %v3064_v36 = vadd.f32 %v1316_v35, %v1308_v33 }
0x116b   :  { %v2510_v39 = vpop.eup %2509  ;;  %2511 = vtanh.f32 %v3064_v36 }
0x116c   :  { %1208 = vrot.lane.b32.xlu0 %v2510_v39, %s2633_s0 }
0x1175   :  { %v2512_v40 = vpop.eup %2511 }
0x1176   :  { %1321 = vrot.lane.b32.xlu1 %v2512_v40, %s2633_s0  ;;  %v2554_v40 = vld [vmem:[%s3245_s4 + $0x20] sm:$0xff]  }
0x11de   :  { %v1209_v37 = vpop.permute.xlu0 %1208 }
0x11df   :  { %v1211_v47 = vmul.f32 %v1209_v37, %v1191_v19  ;;  %v2555_v37 = vld [vmem:[%s3245_s4 + $0x28] sm:$0xff]  }
0x11e1   :  { %v1325_v41 = vpack.c.bf16 %v1211_v47, %v1211_v47 }
0x11e3   :  { %v1327_v38 = vrot.slane %v1325_v41, 1  ;;  %v2556_v41 = vld [vmem:[%s3245_s4 + $0x30] sm:$0xff]  }
0x11e5   :  { %1328 = vrot.lane.b32.xlu0 %v1327_v38, %s2634_s25  ;;  %v2557_v38 = vld [vmem:[%s3245_s4 + $0x38] sm:$0xff]  }
0x11e8   :  { %v1322_v49 = vpop.permute.xlu1 %1321 }
0x11e9   :  { %v3070_v44 = vmul.f32 %v1322_v49, %v1307_v21 }
0x11eb   :  { %v1405_v45 = vpack.c.bf16 %v3070_v44, %v3070_v44 }
0x11ed   :  { %1407 = vrot.lane.b32.xlu1 %v1405_v45, %s2634_s25 }
0x1257   :  { %v1329_v50 = vpop.permute.xlu0 %1328 }
0x1258   :  { %2326 = vmatmul.mubr.msk.bf16.vlgmr.msra.gmra.mrb[40].mxu1 %vm195_vm4, %v1329_v50 }
0x1259   :  { %2338 = vmatpush3.bf16.msra.mxu1 %v2804_v54  ;;  %2341 = vmatprep.mubr.msk.bf16.mxu1 %vm2631_vm0, %v2630_v2  ;;  %v2553_v54 = vld [vmem:[%s3245_s4 + $0x18] sm:$0xff]  }
0x125a   :  { %2339 = vmatprep.subr.bf16.mxu1 %v2630_v2 }
0x125d   :  { %2340 = vmatpush3.bf16.msra.mxu1 %v2810_v55 }
0x125e   :  { %2353 = vmatprep.subr.bf16.mxu1 %v2630_v2 }
0x125f   :  { %v1408_v51 = vpop.permute.xlu1 %1407 }
0x1260   :  { %2334 = vmatmul.mubr.msk.bf16.vlgmr.msra.gmra.mrb[32].mxu0 %vm195_vm4, %v1408_v51  ;;  %2342 = vmatmul.mubr.msk.bf16.vlgmr.msra.gmra.mrb[44].mxu1 %vm195_vm4, %v1329_v50 }
0x1261   :  { %2346 = vmatpush3.bf16.msra.mxu0 %v2754_v22  ;;  %2354 = vmatpush3.bf16.msra.mxu1 %v2820_v60 }
0x1262   :  { %2347 = vmatprep.subr.bf16.mxu0 %v2630_v2  ;;  %2349 = vmatprep.mubr.msk.bf16.mxu0 %vm2631_vm0, %v2630_v2 }
0x1263   :  { %2355 = vmatprep.subr.bf16.mxu1 %v2630_v2  ;;  %2357 = vmatprep.mubr.msk.bf16.mxu1 %vm2631_vm0, %v2630_v2 }
0x1265   :  { %2348 = vmatpush3.bf16.msra.mxu0 %v2553_v54  ;;  %2356 = vmatpush3.bf16.msra.mxu1 %v2828_v62 }
0x1266   :  { %2361 = vmatprep.subr.bf16.mxu0 %v2630_v2  ;;  %2369 = vmatprep.subr.bf16.mxu1 %v2630_v2 }
0x132b   :  { %v1367_v22 = vpop.f32.mrb[40].mxu1 }
0x132c   :  { %v1374_v55 = vrot.slane %v1367_v22, 4  ;;  %v2327_v60 = vpop.f32.mrb[41].mxu1 }
0x132d   :  { %v1370_v42 = vpop.f32.mrb[42].mxu1 }
0x132e   :  { %v1376_v46 = vadd.f32 %v1374_v55, %v2781_v32  ;;  %v2328_v53 = vpop.f32.mrb[43].mxu1 }
0x1330   :  { %v2062_v48 = vmul.f32 -1.442695, %v1376_v46 }
0x1332   :  { %2513 = vpow2.f32 %v2062_v48 }
0x1333   :  { %v1446_v57 = vpop.f32.mrb[32].mxu0  ;;  %v1486_v59 = vpop.f32.mrb[44].mxu1 }
0x1334   :  { %v1487_v61 = vadd.f32 %v1486_v59, %v1446_v57  ;;  %v2335_v56 = vpop.f32.mrb[33].mxu0  ;;  %v2343_v58 = vpop.f32.mrb[45].mxu1 }
0x1335   :  { %v1449_v63 = vpop.f32.mrb[34].mxu0  ;;  %v1489_v62 = vpop.f32.mrb[46].mxu1  ;;  %v3154_v56 = vld [vmem:[%s3246_s5 + $0x1] ss:$0 sm:$0xff] }
0x1336   :  { %v1492_v0 = vadd.f32 %v2855_v13, %v1487_v61  ;;  %v2336_v1 = vpop.f32.mrb[35].mxu0  ;;  %v2344_v3 = vpop.f32.mrb[47].mxu1 }
0x1338   :  { %v2065_v4 = vmul.f32 -1.442695, %v1492_v0 }
0x133a   :  { %2515 = vpow2.f32 %v2065_v4 }
0x133b   :  { %2517 = vtanh.f32 %v1376_v46 }
0x133c   :  { %v2514_v5 = vpop.eup %2513 }
0x133d   :  { %v1381_v6 = vadd.f32 1.0, %v2514_v5 }
0x133f   :  { %2519 = vrcp.f32 %v1381_v6 }
0x1340   :  { %2521 = vtanh.f32 %v1492_v0 }
0x1344   :  { %v2516_v7 = vpop.eup %2515 }
0x1345   :  { %v1497_v8 = vadd.f32 1.0, %v2516_v7  ;;  %v2518_v9 = vpop.eup %2517 }
0x1347   :  { %2523 = vrcp.f32 %v1497_v8 }
0x1349   :  { %v2520_v25 = vpop.eup %2519 }
0x134a   :  { %v1384_v10 = vsel %vm2786_vm7, %v2518_v9, %v2520_v25  ;;  %v2522_v13 = vpop.eup %2521 }
0x134b   :  { %1390 = vrot.lane.b32.xlu0 %v1384_v10, %s2633_s0  ;;  %v1388_v19 = vmul.f32 %v1386_v18, %v1384_v10 }
0x1351   :  { %v2524_v11 = vpop.eup %2523 }
0x1352   :  { %v1500_v12 = vsel %vm2786_vm7, %v2522_v13, %v2524_v11 }
0x1353   :  { %1503 = vrot.lane.b32.xlu1 %v1500_v12, %s2633_s0  ;;  %v1501_v21 = vmul.f32 %v1500_v12, %v3064_v36 }
0x13bd   :  { %v1391_v14 = vpop.permute.xlu0 %1390 }
0x13be   :  { %v1393_v15 = vmul.f32 %v1391_v14, %v1384_v10 }
0x13c0   :  { %1395 = vrot.lane.b32.xlu0 %v1393_v15, %s2634_s25 }
0x13c5   :  { %v1504_v16 = vpop.permute.xlu1 %1503 }
0x13c6   :  { %v1506_v17 = vmul.f32 %v1504_v16, %v1500_v12 }
0x13c8   :  { %1508 = vrot.lane.b32.xlu1 %v1506_v17, %s2634_s25 }
0x1432   :  { %v1396_v34 = vpop.permute.xlu0 %1395 }
0x1433   :  { %v3109_v20 = vadd.f32 %v1396_v34, %v1388_v19 }
0x1435   :  { %2525 = vtanh.f32 %v3109_v20 }
0x143a   :  { %v1509_v23 = vpop.permute.xlu1 %1508 }
0x143b   :  { %v3113_v24 = vadd.f32 %v1509_v23, %v1501_v21 }
0x143d   :  { %2527 = vtanh.f32 %v3113_v24 }
0x143f   :  { %v2526_v26 = vpop.eup %2525 }
0x1440   :  { %1401 = vrot.lane.b32.xlu0 %v2526_v26, %s2633_s0 }
0x1447   :  { %v2528_v27 = vpop.eup %2527 }
0x1448   :  { %1514 = vrot.lane.b32.xlu1 %v2528_v27, %s2633_s0 }
0x14b2   :  { %v1402_v28 = vpop.permute.xlu0 %1401 }
0x14b3   :  { %v1404_v29 = vmul.f32 %v1402_v28, %v1384_v10 }
0x14b5   :  { %v1518_v30 = vpack.c.bf16 %v1404_v29, %v1404_v29 }
0x14b7   :  { %v1520_v31 = vrot.slane %v1518_v30, 2 }
0x14b9   :  { %1521 = vrot.lane.b32.xlu0 %v1520_v31, %s2634_s25 }
0x14ba   :  { %v1515_v33 = vpop.permute.xlu1 %1514 }
0x14bb   :  { %v3119_v35 = vmul.f32 %v1515_v33, %v1500_v12  ;;  %v1579_v12 = vrot.slane %v3109_v20, 6 }
0x14bd   :  { %v1598_v36 = vpack.c.bf16 %v3119_v35, %v3119_v35  ;;  %v1866_v20 = vrot.slane %v3119_v35, 6 }
0x14bf   :  { %1600 = vrot.lane.b32.xlu1 %v1598_v36, %s2634_s25  ;;  %v1879_v33 = vsel %vm1873_vm8, %v3070_v44, %v1866_v20 }
0x152b   :  { %v1522_v39 = vpop.permute.xlu0 %1521 }
0x152c   :  { %2350 = vmatmul.mubr.msk.bf16.vlgmr.msra.gmra.mrb[36].mxu0 %vm195_vm4, %v1522_v39 }
0x152d   :  { %2362 = vmatpush3.bf16.msra.mxu0 %v2554_v40  ;;  %2365 = vmatprep.mubr.msk.bf16.mxu0 %vm2631_vm0, %v2630_v2 }
0x152e   :  { %2363 = vmatprep.subr.bf16.mxu0 %v2630_v2 }
0x1531   :  { %2364 = vmatpush3.bf16.msra.mxu0 %v2555_v37  ;;  %v1601_v47 = vpop.permute.xlu1 %1600 }
0x1532   :  { %2358 = vmatmul.mubr.msk.bf16.vlgmr.msra.gmra.mrb[48].mxu1 %vm195_vm4, %v1601_v47  ;;  %2377 = vmatprep.subr.bf16.mxu0 %v2630_v2 }
0x1533   :  { %2370 = vmatpush3.bf16.msra.mxu1 %v2556_v41  ;;  %2373 = vmatprep.mubr.msk.bf16.mxu1 %vm2631_vm0, %v2630_v2 }
0x1534   :  { %2366 = vmatmul.mubr.msk.bf16.vlgmr.msra.gmra.mrb[40].mxu0 %vm195_vm4, %v1522_v39  ;;  %2371 = vmatprep.subr.bf16.mxu1 %v2630_v2 }
0x1535   :  { %2378 = vmatpush3.bf16.msra.mxu0 %v2554_v40  ;;  %2381 = vmatprep.mubr.msk.bf16.mxu0 %vm2631_vm0, %v2630_v2 }
0x1536   :  { %2379 = vmatprep.subr.bf16.mxu0 %v2630_v2 }
0x1537   :  { %2372 = vmatpush3.bf16.msra.mxu1 %v2557_v38 }
0x1538   :  { %2385 = vmatprep.subr.bf16.mxu1 %v2630_v2 }
0x1539   :  { %2380 = vmatpush3.bf16.msra.mxu0 %v2555_v37 }
0x15ff   :  { %v1560_v49 = vpop.f32.mrb[36].mxu0 }
0x1600   :  { %v1567_v45 = vrot.slane %v1560_v49, 2  ;;  %v2351_v50 = vpop.f32.mrb[37].mxu0 }
0x1601   :  { %v1563_v51 = vpop.f32.mrb[38].mxu0 }
0x1602   :  { %v1569_v54 = vadd.f32 %v1567_v45, %v2781_v32  ;;  %v2352_v22 = vpop.f32.mrb[39].mxu0 }
0x1604   :  { %v2067_v55 = vmul.f32 -1.442695, %v1569_v54 }
0x1605   :  { %v1639_v60 = vpop.f32.mrb[48].mxu1 }
0x1606   :  { %2529 = vpow2.f32 %v2067_v55  ;;  %v2359_v42 = vpop.f32.mrb[49].mxu1 }
0x1607   :  { %v1642_v46 = vpop.f32.mrb[50].mxu1  ;;  %v1679_v53 = vpop.f32.mrb[40].mxu0 }
0x1608   :  { %v1680_v48 = vadd.f32 %v1679_v53, %v1639_v60  ;;  %v2360_v57 = vpop.f32.mrb[51].mxu1  ;;  %v2367_v59 = vpop.f32.mrb[41].mxu0 }
0x1609   :  { %v1682_v61 = vpop.f32.mrb[42].mxu0 }
0x160a   :  { %v1685_v58 = vadd.f32 %v3154_v56, %v1680_v48  ;;  %v2368_v63 = vpop.f32.mrb[43].mxu0 }
0x160c   :  { %v2070_v32 = vmul.f32 -1.442695, %v1685_v58 }
0x160e   :  { %2531 = vpow2.f32 %v2070_v32 }
0x160f   :  { %2533 = vtanh.f32 %v1569_v54 }
0x1610   :  { %v2530_v62 = vpop.eup %2529 }
0x1611   :  { %v1574_v0 = vadd.f32 1.0, %v2530_v62 }
0x1613   :  { %2535 = vrcp.f32 %v1574_v0 }
0x1614   :  { %2537 = vtanh.f32 %v1685_v58  ;;  %v2423_v58 = vld [vmem:[%s3247_s6] sm:$0xff]   ;;  %s2636_s6 = smov [#allocation4]  }
0x1618   :  { %v2532_v1 = vpop.eup %2531 }
0x1619   :  { %v1690_v3 = vadd.f32 1.0, %v2532_v1  ;;  %v2534_v4 = vpop.eup %2533 }
0x161b   :  { %2539 = vrcp.f32 %v1690_v3 }
0x161d   :  { %v2536_v5 = vpop.eup %2535 }
0x161e   :  { %v1577_v6 = vsel %vm2786_vm7, %v2534_v4, %v2536_v5  ;;  %v2538_v7 = vpop.eup %2537 }
0x161f   :  { %1583 = vrot.lane.b32.xlu0 %v1577_v6, %s2633_s0  ;;  %v1581_v14 = vmul.f32 %v1579_v12, %v1577_v6 }
0x1625   :  { %v2540_v8 = vpop.eup %2539 }
0x1626   :  { %v1693_v9 = vsel %vm2786_vm7, %v2538_v7, %v2540_v8 }
0x1627   :  { %1696 = vrot.lane.b32.xlu1 %v1693_v9, %s2633_s0  ;;  %v1694_v17 = vmul.f32 %v1693_v9, %v3113_v24 }
0x1691   :  { %v1584_v25 = vpop.permute.xlu0 %1583 }
0x1692   :  { %v1586_v10 = vmul.f32 %v1584_v25, %v1577_v6 }
0x1694   :  { %1588 = vrot.lane.b32.xlu0 %v1586_v10, %s2634_s25 }
0x1699   :  { %v1697_v13 = vpop.permute.xlu1 %1696 }
0x169a   :  { %v1699_v11 = vmul.f32 %v1697_v13, %v1693_v9 }
0x169c   :  { %1701 = vrot.lane.b32.xlu1 %v1699_v11, %s2634_s25 }
0x1706   :  { %v1589_v15 = vpop.permute.xlu0 %1588 }
0x1707   :  { %v1591_v16 = vadd.f32 %v1589_v15, %v1581_v14 }
0x1709   :  { %2541 = vtanh.f32 %v1591_v16 }
0x170e   :  { %v1702_v18 = vpop.permute.xlu1 %1701 }
0x170f   :  { %v1704_v19 = vadd.f32 %v1702_v18, %v1694_v17 }
0x1711   :  { %2543 = vtanh.f32 %v1704_v19 }
0x1713   :  { %v2542_v34 = vpop.eup %2541 }
0x1714   :  { %1594 = vrot.lane.b32.xlu0 %v2542_v34, %s2633_s0 }
0x171b   :  { %v2544_v21 = vpop.eup %2543 }
0x171c   :  { %1707 = vrot.lane.b32.xlu1 %v2544_v21, %s2633_s0 }
0x1786   :  { %v1595_v23 = vpop.permute.xlu0 %1594 }
0x1787   :  { %v1597_v26 = vmul.f32 %v1595_v23, %v1577_v6 }
0x1789   :  { %v1711_v27 = vpack.c.bf16 %v1597_v26, %v1597_v26 }
0x178b   :  { %v1760_v28 = vrot.slane %v1711_v27, 3 }
0x178d   :  { %1761 = vrot.lane.b32.xlu1 %v1760_v28, %s2634_s25 }
0x178e   :  { %v1708_v29 = vpop.permute.xlu1 %1707 }
0x178f   :  { %v1710_v30 = vmul.f32 %v1708_v29, %v1693_v9 }
0x1791   :  { %v1712_v24 = vpack.c.bf16 %v1710_v30, %v1710_v30  ;;  %v1869_v31 = vrot.slane %v1710_v30, 4 }
0x1793   :  { %v1880_v36 = vsel %vm1875_vm9, %v1879_v33, %v1869_v31  ;;  %1714 = vrot.lane.b32.xlu0 %v1712_v24, %s2634_s25 }
0x17ff   :  { %v1762_v39 = vpop.permute.xlu1 %1761 }
0x1800   :  { %2382 = vmatmul.mubr.msk.bf16.vlgmr.msra.gmra.mrb[44].mxu0 %vm195_vm4, %v1762_v39 }
0x1805   :  { %v1715_v40 = vpop.permute.xlu0 %1714 }
0x1806   :  { %2374 = vmatmul.mubr.msk.bf16.vlgmr.msra.gmra.mrb[52].mxu1 %vm195_vm4, %v1715_v40 }
0x1807   :  { %2389 = vmatprep.mubr.msk.bf16.mxu1 %vm2631_vm0, %v2630_v2  ;;  %2386 = vmatpush3.bf16.msra.mxu1 %v2423_v58 }
0x1808   :  { %2387 = vmatprep.subr.bf16.mxu1 %v2630_v2 }
0x180b   :  { %2388 = vmatpush3.bf16.msra.mxu1 %v2424_v43 }
0x18d3   :  { %v1800_v35 = vpop.f32.mrb[44].mxu0 }
0x18d4   :  { %v2383_v37 = vpop.f32.mrb[45].mxu0 }
0x18d5   :  { %v1803_v47 = vpop.f32.mrb[46].mxu0 }
0x18d6   :  { %v2384_v41 = vpop.f32.mrb[47].mxu0 }
0x18d9   :  { %v1753_v38 = vpop.f32.mrb[52].mxu1 }
0x18da   :  { %v1801_v49 = vadd.f32 %v1800_v35, %v1753_v38  ;;  %v2375_v44 = vpop.f32.mrb[53].mxu1 }
0x18db   :  { %v1756_v45 = vpop.f32.mrb[54].mxu1 }
0x18dc   :  { %v1806_v50 = vadd.f32 %v3154_v56, %v1801_v49  ;;  %v2376_v51 = vpop.f32.mrb[55].mxu1 }
0x18de   :  { %v2073_v54 = vmul.f32 -1.442695, %v1806_v50 }
0x18e0   :  { %2545 = vpow2.f32 %v2073_v54 }
0x18e1   :  { %2547 = vtanh.f32 %v1806_v50 }
0x18ea   :  { %v2546_v22 = vpop.eup %2545 }
0x18eb   :  { %v1811_v55 = vadd.f32 1.0, %v2546_v22  ;;  %v2548_v60 = vpop.eup %2547 }
0x18ed   :  { %2549 = vrcp.f32 %v1811_v55 }
0x18f7   :  { %v2550_v42 = vpop.eup %2549 }
0x18f8   :  { %v1814_v46 = vsel %vm2786_vm7, %v2548_v60, %v2550_v42 }
0x18f9   :  { %1817 = vrot.lane.b32.xlu0 %v1814_v46, %s2633_s0  ;;  %v1815_v57 = vmul.f32 %v1814_v46, %v1704_v19 }
0x196b   :  { %v1818_v53 = vpop.permute.xlu0 %1817 }
0x196c   :  { %v1820_v48 = vmul.f32 %v1818_v53, %v1814_v46 }
0x196e   :  { %1822 = vrot.lane.b32.xlu1 %v1820_v48, %s2634_s25 }
0x19e0   :  { %v1823_v59 = vpop.permute.xlu1 %1822 }
0x19e1   :  { %v1825_v61 = vadd.f32 %v1823_v59, %v1815_v57 }
0x19e3   :  { %2551 = vtanh.f32 %v1825_v61 }
0x19ed   :  { %v2552_v56 = vpop.eup %2551 }
0x19ee   :  { %1828 = vrot.lane.b32.xlu0 %v2552_v56, %s2633_s0  ;;  %s1972_s0 = sshll.u32 %s2636_s6, 4  ;;  %s1973_s0 = int_to_ptr.vmem [resolvable:$true] %s1972_s0 }
0x19ef   :  { %s2559_s13 = scalar_lea.vmem %s1973_s0, 64  ;;  %p2564_p1 = scmp.lt.s32.totalorder %s1973_s0, %s1973_s0 }
0x19f0   :  { %p2560_p0 = scmp.ne.s32.totalorder %s1973_s0, %s2559_s13  ;;  %p2565_p2 = scmp.lt.s32.totalorder %s2559_s13, %s2559_s13 }
0x19f2   :  { %1833 = vrot.lane.b32.xlu0 %v1597_v26, %s2634_s25  ;;  %p2566_p3 = por %p2565_p2, %p2564_p1 }
0x19f4   :  { %p2567_p4 = pnand %p2566_p3, %p2560_p0 }
0x19f6   :  { %1839 = vrot.lane.b32.xlu0 %v1591_v16, %s2635_s12 }
0x1a60   :  { %v1829_v63 = vpop.permute.xlu0 %1828 }
0x1a61   :  { %v1831_v32 = vmul.f32 %v1829_v63, %v1814_v46 }
0x1a63   :  { %v1871_v62 = vrot.slane %v1831_v32, 2 }
0x1a64   :  { %v1834_v0 = vpop.permute.xlu0 %1833 }
0x1a65   :  { %1837 = vst.msk [vmem:[#allocation4 - $0x6] sm:$0xc0] %vm1836_vm11, %v1834_v0  ;;  %v1881_v1 = vsel %vm1877_vm10, %v1880_v36, %v1871_v62 }
0x1a66   :  { %v1882_v3 = vpack.c.bf16 %v1881_v1, %v3026_v52 }
0x1a68   :  { %1895 = vrot.lane.b32.xlu1 %v1882_v3, %s2634_s25  ;;  %v1840_v4 = vpop.permute.xlu0 %1839 }
0x1a69   :  { %1842 = vst.msk [vmem:[#allocation6 - $0x6] sm:$0xc0] %vm1836_vm11, %v1840_v4 }
0x1a6c   :  { %1844 = vrot.lane.b32.xlu1 %v1831_v32, %s2634_s25 }
0x1a70   :  { %1851 = vrot.lane.b32.xlu1 %v1825_v61, %s2635_s12 }
0x1ada   :  { %v1896_v2 = vpop.permute.xlu1 %1895 }
0x1adb   :  { %2390 = vmatmul.mubr.msk.bf16.vlgmr.msra.gmra.mrb[56].mxu1 %vm195_vm4, %v1896_v2 }
0x1ade   :  { %v1845_v5 = vpop.permute.xlu1 %1844 }
0x1adf   :  { %1849 = vst.msk [vmem:[#allocation4 + $0x2] sm:$0x3] %vm1848_vm12, %v1845_v5 }
0x1ae2   :  { %v1852_v6 = vpop.permute.xlu1 %1851 }
0x1ae3   :  { %1855 = vst.msk [vmem:[#allocation6 + $0x2] sm:$0x3] %vm1848_vm12, %v1852_v6 }
0x1ae4   :  { %2570 = shalt.err (!%p2567_p4)
}
0x1ae5   :  { %s2571_s2 = scalar_lea.hbm %s3250_s9, 64 }
0x1ae6   :  { %p2572_p5 = scmp.ne.s32.totalorder %s3250_s9, %s2571_s2  ;;  %p2575_p6 = scmp.lt.u32.totalorder %s2571_s2, %s3250_s9 }
0x1ae8   :  { %p2577_p7 = pnand %p2575_p6, %p2572_p5 }
0x1aea   :  { %2580 = shalt.err (!%p2577_p7)
}
0x1aeb   :  { %s2637_s18 = smov 2   ;;  %s2638_s21 = smov [#allocation6]  }
0x1aec   :  { %1978 = dma.vmem_to_hbm [thread:$0]  %s1973_s0, 64, %s3250_s9, [#allocation5], %s2634_s25, %s2634_s25, %s2637_s18  }
0x1aed   :  { %s1984_s22 = sshll.u32 %s2638_s21, 4  ;;  %s1985_s22 = int_to_ptr.vmem [resolvable:$true] %s1984_s22 }
0x1aee   :  { %s2581_s23 = scalar_lea.vmem %s1985_s22, 64  ;;  %p2586_p9 = scmp.lt.s32.totalorder %s1985_s22, %s1985_s22 }
0x1aef   :  { %p2582_p8 = scmp.ne.s32.totalorder %s1985_s22, %s2581_s23  ;;  %p2587_p10 = scmp.lt.s32.totalorder %s2581_s23, %s2581_s23 }
0x1af1   :  { %p2588_p11 = por %p2587_p10, %p2586_p9 }
0x1af3   :  { %p2589_p12 = pnand %p2588_p11, %p2582_p8 }
0x1af5   :  { %2592 = shalt.err (!%p2589_p12)
}
0x1af6   :  { %s2593_s27 = scalar_lea.hbm %s3251_s10, 64 }
0x1af7   :  { %p2594_p13 = scmp.ne.s32.totalorder %s3251_s10, %s2593_s27  ;;  %p2597_p0 = scmp.lt.u32.totalorder %s2593_s27, %s3251_s10 }
0x1af9   :  { %p2599_p1 = pnand %p2597_p0, %p2594_p13 }
0x1afb   :  { %2602 = shalt.err (!%p2599_p1)
}
0x1afc   :  { %1990 = dma.vmem_to_hbm [thread:$0]  %s1985_s22, 64, %s3251_s10, [#allocation5], %s2634_s25, %s2634_s25, %s2637_s18  }
0x1afd   :  { %v2074_v52 = vld [vmem:[%s3248_s7] ss:$0 sm:$0xff]  ;;  %s2639_s6 = smov [#allocation2]  }
0x1afe   :  { %s1960_s0 = sshll.u32 %s2639_s6, 4  ;;  %s1961_s0 = int_to_ptr.vmem [resolvable:$true] %s1960_s0 }
0x1aff   :  { %s2603_s13 = scalar_lea.vmem %s1961_s0, 256  ;;  %p2608_p3 = scmp.lt.s32.totalorder %s1961_s0, %s1961_s0 }
0x1b00   :  { %p2604_p2 = scmp.ne.s32.totalorder %s1961_s0, %s2603_s13  ;;  %p2609_p4 = scmp.lt.s32.totalorder %s2603_s13, %s2603_s13 }
0x1b02   :  { %p2610_p5 = por %p2609_p4, %p2608_p3 }
0x1b04   :  { %p2611_p6 = pnand %p2610_p5, %p2604_p2 }
0x1bae   :  { %v1946_v7 = vpop.f32.mrb[56].mxu1 }
0x1baf   :  { %v1947_v8 = vadd.f32 %v2074_v52, %v1946_v7  ;;  %v2391_v9 = vpop.f32.mrb[57].mxu1 }
0x1bb0   :  { %v1949_v25 = vpop.f32.mrb[58].mxu1 }
0x1bb1   :  { %1953 = vst [vmem:[#allocation2] sm:$0xff] %v1947_v8  ;;  %v1950_v10 = vadd.f32 %v2074_v52, %v1949_v25  ;;  %v2392_v13 = vpop.f32.mrb[59].mxu1 }
0x1bb3   :  { %1954 = vst [vmem:[#allocation2 + $0x8] sm:$0xff] %v1950_v10 }
0x1bb4   :  { %2614 = shalt.err (!%p2611_p6)
}
0x1bb5   :  { %s2615_s25 = scalar_lea.hbm %s3249_s8, 256 }
0x1bb6   :  { %p2616_p7 = scmp.ne.s32.totalorder %s3249_s8, %s2615_s25  ;;  %p2619_p8 = scmp.lt.u32.totalorder %s2615_s25, %s3249_s8 }
0x1bb8   :  { %p2621_p9 = pnand %p2619_p8, %p2616_p7 }
0x1bba   :  { %2624 = shalt.err (!%p2621_p9)
}
0x1bbb   :  { %s2640_s16 = smov 128   ;;  %s2641_s17 = smov 8  }
0x1bbc   :  { %1966 = dma.vmem_to_hbm [thread:$0]  %s1961_s0, 256, %s3249_s8, [#allocation3], %s2640_s16, %s2640_s16, %s2641_s17  }
0x1bbd   :  { %2625 = dma.done.wait [#allocation3], 256  }
0x1bbe   :  { %2626 = vsyncadd [#allocation3], 4294967040 }
0x1bbf   :  { %2627 = dma.done.wait [#allocation5], 128  }
0x1bc0   :  { %2628 = vsyncadd [#allocation5], 4294967168 }
0x1bc1   :  { %2000 = vsyncpa [#allocation3], 1 }
0x1bc2   :  { %2001 = vsyncpa [#allocation5], 1 }

</bundles_post_ra>
